<compile_context>
chip_gen: v7x
topology: tpu7x:2x2x1
jax: 0.10.0
libtpu: 0.0.40
codegen_flags: <defaults>
</compile_context>

<pallas_src>
import jax
import jax.numpy as jnp
from jax import lax
from jax.experimental import pallas as pl
from jax.experimental.pallas import tpu as pltpu


_NEG_SLOPE = 0.2                    # nn.LeakyReLU(0.2)
_CHANNELS = (1, 32, 64, 128, 256)   # conv channel progression


# ----------------------------------------------------------------------------
# Fused critic kernel.
# Activations live as values shaped [rows, Bt, W*C]: batch on the sublane dim,
# (W, C) flattened onto lanes.  Each 3x3/stride-2/pad-1 conv is an MXU matmul
# against block-Toeplitz matrices that fold the kx taps, the stride-2 column
# selection and the zero W-padding; the stride-2 row selection is an even/odd
# split of the leading (row) dim only (no gathers, no transposes).
# ----------------------------------------------------------------------------
def _critic_kernel(x_ref, t1, t2, t3, t4, b1, b2, b3, b4, hw_ref, hb_ref,
                   out_ref):
    h = x_ref[...].astype(jnp.float32)                       # [H, Bt, W*Cin]
    for t_ref, b_ref in ((t1, b1), (t2, b2), (t3, b3), (t4, b4)):
        rows, bt, k = h.shape
        n = t_ref.shape[-1]
        if rows % 2 == 1:                                    # bottom zero pad row
            h = jnp.concatenate(
                [h, jnp.zeros((1, bt, k), jnp.float32)], axis=0)
            rows += 1
        ho = rows // 2
        hr = h.reshape(ho, 2, bt, k)                         # leading-dim split
        even = hr[:, 0]                                      # rows 2*oy   (ky=1)
        odd = hr[:, 1]                                       # rows 2*oy+1 (ky=2)
        if ho > 1:                                           # rows 2*oy-1 (ky=0)
            up = jnp.concatenate(
                [jnp.zeros((1, bt, k), jnp.float32), odd[:ho - 1]], axis=0)
        else:
            up = None        # all-zero operand -> statically skip its matmul

        if t_ref.ndim == 2:
            # K is 128-lane aligned: one fused MXU matmul over the stacked taps
            # (lane concat of up/even/odd is whole-vreg moves).
            parts = [even, odd] if up is None else [up, even, odd]
            w2d = t_ref[k:, :] if up is None else t_ref[...]
            lhs = jnp.concatenate(parts, axis=-1)            # [ho, bt, p*k]
            lhs = lhs.reshape(ho * bt, len(parts) * k)
            z = jnp.dot(lhs.astype(jnp.bfloat16), w2d,
                        preferred_element_type=jnp.float32)
        else:
            # first layer: K = W*Cin is tiny / unaligned -> one matmul per tap.
            def mm(a, w2d, ho=ho, bt=bt, k=k):
                return jnp.dot(a.reshape(ho * bt, k).astype(jnp.bfloat16), w2d,
                               preferred_element_type=jnp.float32)
            z = mm(even, t_ref[1]) + mm(odd, t_ref[2])
            if up is not None:
                z = z + mm(up, t_ref[0])

        z = z + b_ref[...]                                   # bias add (f32)
        z = jnp.where(z > 0, z, _NEG_SLOPE * z)              # LeakyReLU (f32)
        h = z.reshape(ho, bt, n)

    # 1x1 conv (Cout=1) + GlobalMean as a VPU broadcast-multiply + reduces.
    # hw_ref is pre-tiled over Wf and pre-scaled by 1/(Hf*Wf).
    s = jnp.sum(h * hw_ref[...], axis=-1)                    # [Hf, Bt] lane reduce
    s = jnp.sum(s, axis=0, keepdims=True)                    # [1, Bt] sublane reduce
    out_ref[...] = s + hb_ref[...]                           # lane-dense store


def _resident_spec(a):
    """Whole-array block, constant index_map -> resident across the grid."""
    nd = a.ndim
    return pl.BlockSpec(a.shape, lambda i, _nd=nd: (0,) * _nd)


def _choose_batch_tile(batch, cap=128):
    """batch <= cap: one tile covering the 8-padded batch (grid=1; output block
    equals the full array -> lane dense, no partial stores).  batch > cap:
    lane-aligned tiles of `cap` (multiple of 128) -> grid >= 2 so the
    'parallel' axis shards over v7x's two TensorCores and the output stays
    lane dense.  cap=128 fills the v5e MXU M dim in the deepest layer; bump to
    256 on v6e/v7x for very large single-call batches."""
    assert cap % 128 == 0
    b8 = -(-batch // 8) * 8
    return b8 if b8 <= cap else cap


def _vmem_limit_bytes(xk_shape, batch_tile, mats):
    """Rough resident-weights + double-buffered-input + live-activation budget,
    with headroom, clamped to [16 MiB, 48 MiB] (safe on v5e/v6e/v7x)."""
    h, _, w = xk_shape
    resident = sum(int(a.size) * a.dtype.itemsize for pair in mats for a in pair)
    in_tile = h * batch_tile * max(w, 128) * 2                 # bf16, lane-padded
    ho1, wo1 = (h + 1) // 2, (w + 1) // 2
    act = ho1 * batch_tile * wo1 * _CHANNELS[1] * 4 * 6        # peak live values
    total = resident + 2 * in_tile + act + (2 << 20)
    return int(min(max(int(total * 1.5), 16 << 20), 48 << 20))


def _critic_pallas_call(xk, mats, batch_tile):
    """xk: [H, Bpad, W] bf16 with Bpad % batch_tile == 0.  Returns [1, Bpad]."""
    h, bpad, w = xk.shape
    (t1, b1), (t2, b2), (t3, b3), (t4, b4), (hw, hb) = mats
    grid = (bpad // batch_tile,)
    in_specs = [pl.BlockSpec((h, batch_tile, w), lambda i: (0, i, 0))]
    args = [xk]
    for a in (t1, t2, t3, t4, b1, b2, b3, b4, hw, hb):
        in_specs.append(_resident_spec(a))
        args.append(a)
    return pl.pallas_call(
        _critic_kernel,
        grid=grid,
        in_specs=in_specs,
        out_specs=pl.BlockSpec((1, batch_tile), lambda i: (0, i)),
        out_shape=jax.ShapeDtypeStruct((1, bpad), jnp.float32),
        compiler_params=pltpu.CompilerParams(
            dimension_semantics=("parallel",),          # shard batch tiles (v7x)
            vmem_limit_bytes=_vmem_limit_bytes(xk.shape, batch_tile, mats)),
    )(*args)


# ----------------------------------------------------------------------------
# Weight preparation (JAX glue, runs once at init / per input resolution).
# ----------------------------------------------------------------------------
def _build_toeplitz_conv(w, b, w_in):
    """3x3/stride-2/pad-1 conv -> (T [3, W_in*Ci, Wo*Co] bf16, b [1, Wo*Co] f32, Wo)."""
    co, ci, _, _ = w.shape
    wo = (w_in + 1) // 2
    k = w_in * ci
    t = jnp.zeros((3, k, wo * co), jnp.float32)
    wt = jnp.transpose(w.astype(jnp.float32), (2, 3, 1, 0))    # [ky, kx, ci, co]
    for ky in range(3):
        for ox in range(wo):
            for kx in range(3):
                iw = 2 * ox + kx - 1
                if 0 <= iw < w_in:
                    t = t.at[ky, iw * ci:(iw + 1) * ci,
                             ox * co:(ox + 1) * co].set(wt[ky, kx])
    t = t.astype(jnp.bfloat16)                                 # bf16 MXU operand
    b_flat = jnp.tile(b.astype(jnp.float32), (wo,)).reshape(1, wo * co)
    return t, b_flat, wo


def _build_head_vec(w, b, w_f, h_f):
    """1x1 conv (Co=1) + GlobalMean as one f32 broadcast weight [1,1,Wf*Ci]."""
    co, ci, _, _ = w.shape
    vec = w[0, :, 0, 0].astype(jnp.float32)                    # [ci]
    vec = jnp.tile(vec, (w_f,)) * (1.0 / float(h_f * w_f))     # fold GlobalMean
    return vec.reshape(1, 1, w_f * ci), b.astype(jnp.float32).reshape(1, 1)


def _init_conv(key, ci, co, k):
    # PyTorch Conv2d default init: U(-1/sqrt(fan_in), 1/sqrt(fan_in)).
    kw_key, kb_key = jax.random.split(key)
    bound = 1.0 / float(ci * k * k) ** 0.5
    w = jax.random.uniform(kw_key, (co, ci, k, k), jnp.float32, -bound, bound)
    b = jax.random.uniform(kb_key, (co,), jnp.float32, -bound, bound)
    return w, b


def _spectral_normalize(w, key, n_iter=1, eps=1e-12):
    m = w.reshape(w.shape[0], -1)
    u = jax.random.normal(key, (m.shape[0],), jnp.float32)
    u = u / (jnp.linalg.norm(u) + eps)
    v = m.T @ u
    for _ in range(n_iter):
        v = m.T @ u
        v = v / (jnp.linalg.norm(v) + eps)
        u = m @ v
        u = u / (jnp.linalg.norm(u) + eps)
    sigma = u @ (m @ v)
    return w / sigma


# ----------------------------------------------------------------------------
# Modules mirroring the PyTorch classes.
# ----------------------------------------------------------------------------
class SilhouetteCriticNetwork:
    def __init__(self, key, tile_cap=128):
        self.tile_cap = tile_cap
        keys = jax.random.split(key, 9)
        self.conv_w, self.conv_b = [], []
        for i in range(4):
            w, b = _init_conv(keys[2 * i], _CHANNELS[i], _CHANNELS[i + 1], 3)
            w = _spectral_normalize(w, keys[2 * i + 1])
            self.conv_w.append(w)
            self.conv_b.append(b)
        self.head_w, self.head_b = _init_conv(keys[8], _CHANNELS[4], 1, 1)
        self._mat_cache = {}

    def _mats_for_shape(self, h_in, w_in):
        key = (h_in, w_in)
        if key not in self._mat_cache:
            mats, cur_w = [], w_in
            for w, b in zip(self.conv_w, self.conv_b):
                t, b_flat, cur_w = _build_toeplitz_conv(w, b, cur_w)
                k, n = t.shape[1], t.shape[2]
                if k % 128 == 0:            # fused-tap form for aligned layers
                    t = t.reshape(3 * k, n)
                mats.append((t, b_flat))
            h_f = h_in
            for _ in range(4):
                h_f = (h_f + 1) // 2
            mats.append(_build_head_vec(self.head_w, self.head_b, cur_w, h_f))
            self._mat_cache[key] = tuple(mats)
        return self._mat_cache[key]

    def __call__(self, x):
        """x: [B, 1, H, W] -> critic scores [B, 1]."""
        b, c, h, w = x.shape
        assert c == 1, "SilhouetteCriticNetwork expects a single input channel"
        mats = self._mats_for_shape(h, w)
        bt = _choose_batch_tile(b, self.tile_cap)
        bpad = -(-b // bt) * bt
        # [H, B, W], bf16 (exact for binary silhouettes).
        xk = jnp.transpose(x[:, 0, :, :], (1, 0, 2)).astype(jnp.bfloat16)
        if bpad != b:
            xk = jnp.pad(xk, ((0, 0), (0, bpad - b), (0, 0)))
        scores = _critic_pallas_call(xk, mats, bt)            # [1, Bpad]
        return scores[0, :b].reshape(b, 1)                    # drop padded rows


class SilhouetteAdversary:
    def __init__(self, key, tile_cap=128):
        self.f = SilhouetteCriticNetwork(key, tile_cap)

    def __call__(self, for_gen, fakes, reals=None, faces_fake=None,
                 faces_real=None):
        if for_gen:
            return self.compute_loss_for_generator(fakes)
        # Fuse the real & fake critic evaluations into ONE pallas_call
        # (single launch, single weight DMA) by concatenating on batch.
        b = reals.shape[0]
        scores = self.f(jnp.concatenate([reals, fakes], axis=0))
        real_scores, fake_scores = scores[:b], scores[b:]
        real_loss = jnp.mean((real_scores - 1.0) ** 2)   # MSE vs `valid` (=1)
        fake_loss = jnp.mean((fake_scores - 0.0) ** 2)   # MSE vs `fake`  (=0)
        return 0.5 * (real_loss + fake_loss)

    def compute_loss_for_generator(self, imgs):
        return 0.5 * jnp.mean((self.f(imgs) - 1.0) ** 2)


# ----------------------------------------------------------------------------
# Plain-JAX reference (lax.conv) used only as an in-script correctness check.
# Conv weights are rounded to bf16 (exactly what the kernel stores) so the
# check isolates the kernel's remaining bf16 activation rounding.
# ----------------------------------------------------------------------------
def _reference_scores(x, net):
    h = x.astype(jnp.float32)
    for w, b in zip(net.conv_w, net.conv_b):
        wq = w.astype(jnp.bfloat16).astype(jnp.float32)
        h = lax.conv_general_dilated(
            h, wq, window_strides=(2, 2), padding=((1, 1), (1, 1)),
            dimension_numbers=("NCHW", "OIHW", "NCHW"),
            precision=lax.Precision.HIGHEST)
        h = h + b.reshape(1, -1, 1, 1)
        h = jnp.where(h > 0, h, _NEG_SLOPE * h)
    h = lax.conv_general_dilated(
        h, net.head_w, window_strides=(1, 1), padding=((0, 0), (0, 0)),
        dimension_numbers=("NCHW", "OIHW", "NCHW"),
        precision=lax.Precision.HIGHEST)
    h = h + net.head_b.reshape(1, -1, 1, 1)
    return jnp.mean(h, axis=(2, 3))                      # GlobalMean -> [B, 1]


if __name__ == "__main__":
    key = jax.random.PRNGKey(0)
    k_init, k_fake, k_real = jax.random.split(key, 3)

    batch, spatial = 2, 16
    adv = SilhouetteAdversary(k_init)

    # binary silhouettes, NCHW with a single channel
    fakes = (jax.random.uniform(k_fake, (batch, 1, spatial, spatial)) > 0.5
             ).astype(jnp.float32)
    reals = (jax.random.uniform(k_real, (batch, 1, spatial, spatial)) > 0.5
             ).astype(jnp.float32)

    # sanity: fused Pallas critic vs plain-JAX reference.  Tolerance covers the
    # kernel's bf16 MXU operand rounding (activations cast at 4 matmuls).
    ref = _reference_scores(fakes, adv.f)
    got = adv.f(fakes)
    err = float(jnp.max(jnp.abs(got - ref)))
    scale = float(jnp.max(jnp.abs(ref))) + 1e-6
    assert err <= 5e-2 * scale + 5e-3, f"kernel mismatch: err={err} scale={scale}"

    g_loss = adv(True, fakes)                       # generator loss
    d_loss = adv(False, fakes, reals)               # discriminator loss
    jax.block_until_ready((g_loss, d_loss))
    print("KERNEL_OK")
</pallas_src>

<mosaic_0001>
module attributes {stable_mosaic.version = 11 : i64} {
  func.func @_critic_kernel(%arg0: i32, %arg1: memref<16x8x16xbf16, #tpu.memory_space<vmem>>, %arg2: memref<3x16x256xbf16, #tpu.memory_space<vmem>>, %arg3: memref<768x256xbf16, #tpu.memory_space<vmem>>, %arg4: memref<768x256xbf16, #tpu.memory_space<vmem>>, %arg5: memref<768x256xbf16, #tpu.memory_space<vmem>>, %arg6: memref<1x256xf32, #tpu.memory_space<vmem>>, %arg7: memref<1x256xf32, #tpu.memory_space<vmem>>, %arg8: memref<1x256xf32, #tpu.memory_space<vmem>>, %arg9: memref<1x256xf32, #tpu.memory_space<vmem>>, %arg10: memref<1x1x256xf32, #tpu.memory_space<vmem>>, %arg11: memref<1x1xf32, #tpu.memory_space<vmem>>, %arg12: memref<1x8xf32, #tpu.memory_space<vmem>>) attributes {dimension_semantics = [#tpu.dimension_semantics<parallel>], iteration_bounds = array<i64: 1>, scalar_prefetch = 0 : i64, scratch_operands = 0 : i64, tpu.core_type = #tpu.core_type<tc>, window_params = [{transform_indices = @transform_0, window_bounds = array<i64: 16, 8, 16>}, {pipeline_mode = #tpu.pipeline_mode<synchronous>, transform_indices = @transform_1, window_bounds = array<i64: 3, 16, 256>}, {pipeline_mode = #tpu.pipeline_mode<synchronous>, transform_indices = @transform_2, window_bounds = array<i64: 768, 256>}, {pipeline_mode = #tpu.pipeline_mode<synchronous>, transform_indices = @transform_3, window_bounds = array<i64: 768, 256>}, {pipeline_mode = #tpu.pipeline_mode<synchronous>, transform_indices = @transform_4, window_bounds = array<i64: 768, 256>}, {pipeline_mode = #tpu.pipeline_mode<synchronous>, transform_indices = @transform_5, window_bounds = array<i64: 1, 256>}, {pipeline_mode = #tpu.pipeline_mode<synchronous>, transform_indices = @transform_6, window_bounds = array<i64: 1, 256>}, {pipeline_mode = #tpu.pipeline_mode<synchronous>, transform_indices = @transform_7, window_bounds = array<i64: 1, 256>}, {pipeline_mode = #tpu.pipeline_mode<synchronous>, transform_indices = @transform_8, window_bounds = array<i64: 1, 256>}, {pipeline_mode = #tpu.pipeline_mode<synchronous>, transform_indices = @transform_9, window_bounds = array<i64: 1, 1, 256>}, {pipeline_mode = #tpu.pipeline_mode<synchronous>, transform_indices = @transform_10, window_bounds = array<i64: 1, 1>}, {transform_indices = @transform_11, window_bounds = array<i64: 1, 8>}]} {
    %c0 = arith.constant 0 : index
    %c0_0 = arith.constant 0 : index
    %c0_1 = arith.constant 0 : index
    %0 = vector.load %arg1[%c0, %c0_0, %c0_1] : memref<16x8x16xbf16, #tpu.memory_space<vmem>>, vector<16x8x16xbf16>
    %1 = arith.extf %0 : vector<16x8x16xbf16> to vector<16x8x16xf32>
    %2 = vector.shape_cast %1 : vector<16x8x16xf32> to vector<8x2x8x16xf32>
    %3 = vector.extract_strided_slice %2 {offsets = [0, 0, 0, 0], sizes = [8, 1, 8, 16], strides = [1, 1, 1, 1]} : vector<8x2x8x16xf32> to vector<8x1x8x16xf32>
    %4 = vector.shape_cast %3 : vector<8x1x8x16xf32> to vector<8x8x16xf32>
    %5 = vector.extract_strided_slice %2 {offsets = [0, 1, 0, 0], sizes = [8, 1, 8, 16], strides = [1, 1, 1, 1]} : vector<8x2x8x16xf32> to vector<8x1x8x16xf32>
    %6 = vector.shape_cast %5 : vector<8x1x8x16xf32> to vector<8x8x16xf32>
    %cst = arith.constant 0.000000e+00 : f32
    %7 = vector.broadcast %cst : f32 to vector<1x8x16xf32>
    %8 = vector.extract_strided_slice %6 {offsets = [0, 0, 0], sizes = [7, 8, 16], strides = [1, 1, 1]} : vector<8x8x16xf32> to vector<7x8x16xf32>
    %9 = tpu.concatenate %7, %8 in 0 : vector<1x8x16xf32>, vector<7x8x16xf32> -> vector<8x8x16xf32>
    %c1 = arith.constant 1 : index
    %c0_2 = arith.constant 0 : index
    %c0_3 = arith.constant 0 : index
    %10 = vector.load %arg2[%c1, %c0_2, %c0_3] : memref<3x16x256xbf16, #tpu.memory_space<vmem>>, vector<1x16x256xbf16>
    %11 = vector.shape_cast %10 : vector<1x16x256xbf16> to vector<16x256xbf16>
    %12 = vector.shape_cast %4 : vector<8x8x16xf32> to vector<64x16xf32>
    %13 = arith.truncf %12 : vector<64x16xf32> to vector<64x16xbf16>
    %cst_4 = arith.constant dense<0.000000e+00> : vector<64x256xf32>
    %14 = tpu.matmul %13, %11, %cst_4 {dimension_numbers = #tpu.dot_dimension_numbers<[1], [0], [0], [1], [0, 0, 1, 1], [], []>} : vector<64x16xbf16>, vector<16x256xbf16>, vector<64x256xf32> -> vector<64x256xf32>
    %c2 = arith.constant 2 : index
    %c0_5 = arith.constant 0 : index
    %c0_6 = arith.constant 0 : index
    %15 = vector.load %arg2[%c2, %c0_5, %c0_6] : memref<3x16x256xbf16, #tpu.memory_space<vmem>>, vector<1x16x256xbf16>
    %16 = vector.shape_cast %15 : vector<1x16x256xbf16> to vector<16x256xbf16>
    %17 = vector.shape_cast %6 : vector<8x8x16xf32> to vector<64x16xf32>
    %18 = arith.truncf %17 : vector<64x16xf32> to vector<64x16xbf16>
    %cst_7 = arith.constant dense<0.000000e+00> : vector<64x256xf32>
    %19 = tpu.matmul %18, %16, %cst_7 {dimension_numbers = #tpu.dot_dimension_numbers<[1], [0], [0], [1], [0, 0, 1, 1], [], []>} : vector<64x16xbf16>, vector<16x256xbf16>, vector<64x256xf32> -> vector<64x256xf32>
    %20 = arith.addf %14, %19 : vector<64x256xf32>
    %c0_8 = arith.constant 0 : index
    %c0_9 = arith.constant 0 : index
    %c0_10 = arith.constant 0 : index
    %21 = vector.load %arg2[%c0_8, %c0_9, %c0_10] : memref<3x16x256xbf16, #tpu.memory_space<vmem>>, vector<1x16x256xbf16>
    %22 = vector.shape_cast %21 : vector<1x16x256xbf16> to vector<16x256xbf16>
    %23 = vector.shape_cast %9 : vector<8x8x16xf32> to vector<64x16xf32>
    %24 = arith.truncf %23 : vector<64x16xf32> to vector<64x16xbf16>
    %cst_11 = arith.constant dense<0.000000e+00> : vector<64x256xf32>
    %25 = tpu.matmul %24, %22, %cst_11 {dimension_numbers = #tpu.dot_dimension_numbers<[1], [0], [0], [1], [0, 0, 1, 1], [], []>} : vector<64x16xbf16>, vector<16x256xbf16>, vector<64x256xf32> -> vector<64x256xf32>
    %26 = arith.addf %20, %25 : vector<64x256xf32>
    %c0_12 = arith.constant 0 : index
    %c0_13 = arith.constant 0 : index
    %27 = vector.load %arg6[%c0_12, %c0_13] : memref<1x256xf32, #tpu.memory_space<vmem>>, vector<1x256xf32>
    %28 = vector.broadcast %27 : vector<1x256xf32> to vector<64x256xf32>
    %29 = arith.addf %26, %28 : vector<64x256xf32>
    %cst_14 = arith.constant 0.000000e+00 : f32
    %30 = vector.broadcast %cst_14 : f32 to vector<64x256xf32>
    %31 = arith.cmpf ogt, %29, %30 : vector<64x256xf32>
    %cst_15 = arith.constant 2.000000e-01 : f32
    %32 = vector.broadcast %cst_15 : f32 to vector<64x256xf32>
    %33 = arith.mulf %32, %29 : vector<64x256xf32>
    %34 = arith.select %31, %29, %33 : vector<64x256xi1>, vector<64x256xf32>
    %35 = vector.shape_cast %34 : vector<64x256xf32> to vector<8x8x256xf32>
    %36 = vector.shape_cast %35 : vector<8x8x256xf32> to vector<4x2x8x256xf32>
    %37 = vector.extract_strided_slice %36 {offsets = [0, 0, 0, 0], sizes = [4, 1, 8, 256], strides = [1, 1, 1, 1]} : vector<4x2x8x256xf32> to vector<4x1x8x256xf32>
    %38 = vector.shape_cast %37 : vector<4x1x8x256xf32> to vector<4x8x256xf32>
    %39 = vector.extract_strided_slice %36 {offsets = [0, 1, 0, 0], sizes = [4, 1, 8, 256], strides = [1, 1, 1, 1]} : vector<4x2x8x256xf32> to vector<4x1x8x256xf32>
    %40 = vector.shape_cast %39 : vector<4x1x8x256xf32> to vector<4x8x256xf32>
    %cst_16 = arith.constant 0.000000e+00 : f32
    %41 = vector.broadcast %cst_16 : f32 to vector<1x8x256xf32>
    %42 = vector.extract_strided_slice %40 {offsets = [0, 0, 0], sizes = [3, 8, 256], strides = [1, 1, 1]} : vector<4x8x256xf32> to vector<3x8x256xf32>
    %43 = tpu.concatenate %41, %42 in 0 : vector<1x8x256xf32>, vector<3x8x256xf32> -> vector<4x8x256xf32>
    %c0_17 = arith.constant 0 : index
    %c0_18 = arith.constant 0 : index
    %44 = vector.load %arg3[%c0_17, %c0_18] : memref<768x256xbf16, #tpu.memory_space<vmem>>, vector<768x256xbf16>
    %45 = tpu.concatenate %43, %38, %40 in 2 : vector<4x8x256xf32>, vector<4x8x256xf32>, vector<4x8x256xf32> -> vector<4x8x768xf32>
    %46 = vector.shape_cast %45 : vector<4x8x768xf32> to vector<32x768xf32>
    %47 = arith.truncf %46 : vector<32x768xf32> to vector<32x768xbf16>
    %cst_19 = arith.constant dense<0.000000e+00> : vector<32x256xf32>
    %48 = tpu.matmul %47, %44, %cst_19 {dimension_numbers = #tpu.dot_dimension_numbers<[1], [0], [0], [1], [0, 0, 1, 1], [], []>} : vector<32x768xbf16>, vector<768x256xbf16>, vector<32x256xf32> -> vector<32x256xf32>
    %c0_20 = arith.constant 0 : index
    %c0_21 = arith.constant 0 : index
    %49 = vector.load %arg7[%c0_20, %c0_21] : memref<1x256xf32, #tpu.memory_space<vmem>>, vector<1x256xf32>
    %50 = vector.broadcast %49 : vector<1x256xf32> to vector<32x256xf32>
    %51 = arith.addf %48, %50 : vector<32x256xf32>
    %cst_22 = arith.constant 0.000000e+00 : f32
    %52 = vector.broadcast %cst_22 : f32 to vector<32x256xf32>
    %53 = arith.cmpf ogt, %51, %52 : vector<32x256xf32>
    %cst_23 = arith.constant 2.000000e-01 : f32
    %54 = vector.broadcast %cst_23 : f32 to vector<32x256xf32>
    %55 = arith.mulf %54, %51 : vector<32x256xf32>
    %56 = arith.select %53, %51, %55 : vector<32x256xi1>, vector<32x256xf32>
    %57 = vector.shape_cast %56 : vector<32x256xf32> to vector<4x8x256xf32>
    %58 = vector.shape_cast %57 : vector<4x8x256xf32> to vector<2x2x8x256xf32>
    %59 = vector.extract_strided_slice %58 {offsets = [0, 0, 0, 0], sizes = [2, 1, 8, 256], strides = [1, 1, 1, 1]} : vector<2x2x8x256xf32> to vector<2x1x8x256xf32>
    %60 = vector.shape_cast %59 : vector<2x1x8x256xf32> to vector<2x8x256xf32>
    %61 = vector.extract_strided_slice %58 {offsets = [0, 1, 0, 0], sizes = [2, 1, 8, 256], strides = [1, 1, 1, 1]} : vector<2x2x8x256xf32> to vector<2x1x8x256xf32>
    %62 = vector.shape_cast %61 : vector<2x1x8x256xf32> to vector<2x8x256xf32>
    %cst_24 = arith.constant 0.000000e+00 : f32
    %63 = vector.broadcast %cst_24 : f32 to vector<1x8x256xf32>
    %64 = vector.extract_strided_slice %62 {offsets = [0, 0, 0], sizes = [1, 8, 256], strides = [1, 1, 1]} : vector<2x8x256xf32> to vector<1x8x256xf32>
    %65 = tpu.concatenate %63, %64 in 0 : vector<1x8x256xf32>, vector<1x8x256xf32> -> vector<2x8x256xf32>
    %c0_25 = arith.constant 0 : index
    %c0_26 = arith.constant 0 : index
    %66 = vector.load %arg4[%c0_25, %c0_26] : memref<768x256xbf16, #tpu.memory_space<vmem>>, vector<768x256xbf16>
    %67 = tpu.concatenate %65, %60, %62 in 2 : vector<2x8x256xf32>, vector<2x8x256xf32>, vector<2x8x256xf32> -> vector<2x8x768xf32>
    %68 = vector.shape_cast %67 : vector<2x8x768xf32> to vector<16x768xf32>
    %69 = arith.truncf %68 : vector<16x768xf32> to vector<16x768xbf16>
    %cst_27 = arith.constant dense<0.000000e+00> : vector<16x256xf32>
    %70 = tpu.matmul %69, %66, %cst_27 {dimension_numbers = #tpu.dot_dimension_numbers<[1], [0], [0], [1], [0, 0, 1, 1], [], []>} : vector<16x768xbf16>, vector<768x256xbf16>, vector<16x256xf32> -> vector<16x256xf32>
    %c0_28 = arith.constant 0 : index
    %c0_29 = arith.constant 0 : index
    %71 = vector.load %arg8[%c0_28, %c0_29] : memref<1x256xf32, #tpu.memory_space<vmem>>, vector<1x256xf32>
    %72 = vector.broadcast %71 : vector<1x256xf32> to vector<16x256xf32>
    %73 = arith.addf %70, %72 : vector<16x256xf32>
    %cst_30 = arith.constant 0.000000e+00 : f32
    %74 = vector.broadcast %cst_30 : f32 to vector<16x256xf32>
    %75 = arith.cmpf ogt, %73, %74 : vector<16x256xf32>
    %cst_31 = arith.constant 2.000000e-01 : f32
    %76 = vector.broadcast %cst_31 : f32 to vector<16x256xf32>
    %77 = arith.mulf %76, %73 : vector<16x256xf32>
    %78 = arith.select %75, %73, %77 : vector<16x256xi1>, vector<16x256xf32>
    %79 = vector.shape_cast %78 : vector<16x256xf32> to vector<2x8x256xf32>
    %80 = vector.shape_cast %79 : vector<2x8x256xf32> to vector<1x2x8x256xf32>
    %81 = vector.extract_strided_slice %80 {offsets = [0, 0, 0, 0], sizes = [1, 1, 8, 256], strides = [1, 1, 1, 1]} : vector<1x2x8x256xf32> to vector<1x1x8x256xf32>
    %82 = vector.shape_cast %81 : vector<1x1x8x256xf32> to vector<1x8x256xf32>
    %83 = vector.extract_strided_slice %80 {offsets = [0, 1, 0, 0], sizes = [1, 1, 8, 256], strides = [1, 1, 1, 1]} : vector<1x2x8x256xf32> to vector<1x1x8x256xf32>
    %84 = vector.shape_cast %83 : vector<1x1x8x256xf32> to vector<1x8x256xf32>
    %c256 = arith.constant 256 : index
    %c0_32 = arith.constant 0 : index
    %85 = vector.load %arg5[%c256, %c0_32] : memref<768x256xbf16, #tpu.memory_space<vmem>>, vector<512x256xbf16>
    %86 = tpu.concatenate %82, %84 in 2 : vector<1x8x256xf32>, vector<1x8x256xf32> -> vector<1x8x512xf32>
    %87 = vector.shape_cast %86 : vector<1x8x512xf32> to vector<8x512xf32>
    %88 = arith.truncf %87 : vector<8x512xf32> to vector<8x512xbf16>
    %cst_33 = arith.constant dense<0.000000e+00> : vector<8x256xf32>
    %89 = tpu.matmul %88, %85, %cst_33 {dimension_numbers = #tpu.dot_dimension_numbers<[1], [0], [0], [1], [0, 0, 1, 1], [], []>} : vector<8x512xbf16>, vector<512x256xbf16>, vector<8x256xf32> -> vector<8x256xf32>
    %c0_34 = arith.constant 0 : index
    %c0_35 = arith.constant 0 : index
    %90 = vector.load %arg9[%c0_34, %c0_35] : memref<1x256xf32, #tpu.memory_space<vmem>>, vector<1x256xf32>
    %91 = vector.broadcast %90 : vector<1x256xf32> to vector<8x256xf32>
    %92 = arith.addf %89, %91 : vector<8x256xf32>
    %cst_36 = arith.constant 0.000000e+00 : f32
    %93 = vector.broadcast %cst_36 : f32 to vector<8x256xf32>
    %94 = arith.cmpf ogt, %92, %93 : vector<8x256xf32>
    %cst_37 = arith.constant 2.000000e-01 : f32
    %95 = vector.broadcast %cst_37 : f32 to vector<8x256xf32>
    %96 = arith.mulf %95, %92 : vector<8x256xf32>
    %97 = arith.select %94, %92, %96 : vector<8x256xi1>, vector<8x256xf32>
    %98 = vector.shape_cast %97 : vector<8x256xf32> to vector<1x8x256xf32>
    %c0_38 = arith.constant 0 : index
    %c0_39 = arith.constant 0 : index
    %c0_40 = arith.constant 0 : index
    %99 = vector.load %arg10[%c0_38, %c0_39, %c0_40] : memref<1x1x256xf32, #tpu.memory_space<vmem>>, vector<1x1x256xf32>
    %100 = vector.broadcast %99 : vector<1x1x256xf32> to vector<1x8x256xf32>
    %101 = arith.mulf %98, %100 : vector<1x8x256xf32>
    %cst_41 = arith.constant dense<0.000000e+00> : vector<1x8xf32>
    %102 = vector.multi_reduction <add>, %101, %cst_41 [2] : vector<1x8x256xf32> to vector<1x8xf32>
    %cst_42 = arith.constant dense<0.000000e+00> : vector<8xf32>
    %103 = vector.multi_reduction <add>, %102, %cst_42 [0] : vector<1x8xf32> to vector<8xf32>
    %104 = vector.shape_cast %103 : vector<8xf32> to vector<1x8xf32>
    %c0_43 = arith.constant 0 : index
    %c0_44 = arith.constant 0 : index
    %105 = vector.load %arg11[%c0_43, %c0_44] : memref<1x1xf32, #tpu.memory_space<vmem>>, vector<1x1xf32>
    %106 = vector.broadcast %105 : vector<1x1xf32> to vector<1x8xf32>
    %107 = arith.addf %104, %106 : vector<1x8xf32>
    %c0_45 = arith.constant 0 : index
    %c0_46 = arith.constant 0 : index
    %108 = vector.load %arg12[%c0_45, %c0_46] : memref<1x8xf32, #tpu.memory_space<vmem>>, vector<1x8xf32>
    tpu.vector_store %arg12[%c0_45, %c0_46], %107 {strides = array<i32>} : memref<1x8xf32, #tpu.memory_space<vmem>>, vector<1x8xf32>,
    return
  }
  func.func @transform_0(%arg0: i32) -> (i32, i32, i32) {
    %c0_i32 = arith.constant 0 : i32
    %c0_i32_0 = arith.constant 0 : i32
    %c0_i32_1 = arith.constant 0 : i32
    return %c0_i32, %arg0, %c0_i32_0 : i32, i32, i32
  }
  func.func @transform_1(%arg0: i32) -> (i32, i32, i32) {
    %c0_i32 = arith.constant 0 : i32
    %c0_i32_0 = arith.constant 0 : i32
    %c0_i32_1 = arith.constant 0 : i32
    %c0_i32_2 = arith.constant 0 : i32
    return %c0_i32, %c0_i32_0, %c0_i32_1 : i32, i32, i32
  }
  func.func @transform_2(%arg0: i32) -> (i32, i32) {
    %c0_i32 = arith.constant 0 : i32
    %c0_i32_0 = arith.constant 0 : i32
    %c0_i32_1 = arith.constant 0 : i32
    return %c0_i32, %c0_i32_0 : i32, i32
  }
  func.func @transform_3(%arg0: i32) -> (i32, i32) {
    %c0_i32 = arith.constant 0 : i32
    %c0_i32_0 = arith.constant 0 : i32
    %c0_i32_1 = arith.constant 0 : i32
    return %c0_i32, %c0_i32_0 : i32, i32
  }
  func.func @transform_4(%arg0: i32) -> (i32, i32) {
    %c0_i32 = arith.constant 0 : i32
    %c0_i32_0 = arith.constant 0 : i32
    %c0_i32_1 = arith.constant 0 : i32
    return %c0_i32, %c0_i32_0 : i32, i32
  }
  func.func @transform_5(%arg0: i32) -> (i32, i32) {
    %c0_i32 = arith.constant 0 : i32
    %c0_i32_0 = arith.constant 0 : i32
    %c0_i32_1 = arith.constant 0 : i32
    return %c0_i32, %c0_i32_0 : i32, i32
  }
  func.func @transform_6(%arg0: i32) -> (i32, i32) {
    %c0_i32 = arith.constant 0 : i32
    %c0_i32_0 = arith.constant 0 : i32
    %c0_i32_1 = arith.constant 0 : i32
    return %c0_i32, %c0_i32_0 : i32, i32
  }
  func.func @transform_7(%arg0: i32) -> (i32, i32) {
    %c0_i32 = arith.constant 0 : i32
    %c0_i32_0 = arith.constant 0 : i32
    %c0_i32_1 = arith.constant 0 : i32
    return %c0_i32, %c0_i32_0 : i32, i32
  }
  func.func @transform_8(%arg0: i32) -> (i32, i32) {
    %c0_i32 = arith.constant 0 : i32
    %c0_i32_0 = arith.constant 0 : i32
    %c0_i32_1 = arith.constant 0 : i32
    return %c0_i32, %c0_i32_0 : i32, i32
  }
  func.func @transform_9(%arg0: i32) -> (i32, i32, i32) {
    %c0_i32 = arith.constant 0 : i32
    %c0_i32_0 = arith.constant 0 : i32
    %c0_i32_1 = arith.constant 0 : i32
    %c0_i32_2 = arith.constant 0 : i32
    return %c0_i32, %c0_i32_0, %c0_i32_1 : i32, i32, i32
  }
  func.func @transform_10(%arg0: i32) -> (i32, i32) {
    %c0_i32 = arith.constant 0 : i32
    %c0_i32_0 = arith.constant 0 : i32
    %c0_i32_1 = arith.constant 0 : i32
    return %c0_i32, %c0_i32_0 : i32, i32
  }
  func.func @transform_11(%arg0: i32) -> (i32, i32) {
    %c0_i32 = arith.constant 0 : i32
    %c0_i32_0 = arith.constant 0 : i32
    return %c0_i32, %arg0 : i32, i32
  }
}

</mosaic_0001>

<bundles_post_ra>
// kernel: tpu_custom_call.1
= control target key start
LH: loop header
LB: loop body
LE: loop exit
PB: predicated region body
PF: predicated region fallthrough
CT: control target
= control target key end

     0   :  { %s3921_s0 = inlined_call_operand.hbm [shape: bf16[16,8,16], index: 0, kind: input, shape index: {}]   ;;  %s3922_s1 = inlined_call_operand.hbm [shape: bf16[3,16,256], index: 1, kind: input, shape index: {}]   ;;  %s3923_s2 = inlined_call_operand.hbm [shape: bf16[768,256], index: 2, kind: input, shape index: {}]   ;;  %s3924_s3 = inlined_call_operand.hbm [shape: bf16[768,256], index: 3, kind: input, shape index: {}]   ;;  %s3925_s4 = inlined_call_operand.hbm [shape: bf16[768,256], index: 4, kind: input, shape index: {}]   ;;  %s3926_s5 = inlined_call_operand.vmem [shape: f32[1,256], index: 5, kind: input, shape index: {}]   ;;  %s3927_s6 = inlined_call_operand.vmem [shape: f32[1,256], index: 6, kind: input, shape index: {}]   ;;  %s3928_s7 = inlined_call_operand.vmem [shape: f32[1,256], index: 7, kind: input, shape index: {}]   ;;  %s3929_s8 = inlined_call_operand.vmem [shape: f32[1,256], index: 8, kind: input, shape index: {}]   ;;  %s3930_s9 = inlined_call_operand.vmem [shape: f32[1,1,256], index: 9, kind: input, shape index: {}]   ;;  %s3931_s10 = inlined_call_operand.<no memory space> [shape: f32[1,1], index: 10, kind: input, shape index: {}]   ;;  %s3932_s11 = inlined_call_operand.hbm [shape: f32[1,8], index: 11, kind: output, shape index: {}]  }
   0x1   :  { %v16_v0 = vstv %s3931_s10 }
   0x2   :  { %17 = vst [vmem:[#allocation2] sm:$0x1] %v16_v0 }
   0x3   :  { %18 = vsyncpa [#allocation4], 0 }
   0x4   :  { %19 = vsyncpa [#allocation7], 0 }
   0x5   :  { %20 = vsyncpa [#allocation10], 0 }
   0x6   :  { %21 = vsyncpa [#allocation5], 0  ;;  %s3518_s19 = smov [#allocation6]   ;;  %s3378_s23 = scalar_lea.hbm %s3922_s1, 768 }
   0x7   :  { %s39_s20 = sshll.u32 %s3518_s19, 4  ;;  %p3379_p0 = scmp.ne.s32.totalorder %s3922_s1, %s3378_s23  ;;  %s40_s20 = int_to_ptr.vmem [resolvable:$true] %s39_s20 }
   0x8   :  { %p3382_p1 = scmp.lt.u32.totalorder %s3378_s23, %s3922_s1 }
   0xa   :  { %p3384_p2 = pnand %p3382_p1, %p3379_p0 }
   0xc   :  { %3387 = shalt.err (!%p3384_p2)
}
   0xd   :  { %s3388_s10 = scalar_lea.vmem %s40_s20, 768  ;;  %p3393_p4 = scmp.lt.s32.totalorder %s40_s20, %s40_s20 }
   0xe   :  { %p3389_p3 = scmp.ne.s32.totalorder %s40_s20, %s3388_s10  ;;  %p3394_p5 = scmp.lt.s32.totalorder %s3388_s10, %s3388_s10 }
  0x10   :  { %p3395_p6 = por %p3394_p5, %p3393_p4 }
  0x12   :  { %p3396_p7 = pnand %p3395_p6, %p3389_p3 }
  0x14   :  { %3399 = shalt.err (!%p3396_p7)
}
  0x15   :  { %s3519_s28 = smov 128   ;;  %s3520_s29 = smov 8  }
  0x16   :  { %45 = dma.hbm_to_vmem [thread:$0]  %s3922_s1, 768, %s40_s20, [#allocation7], %s3519_s28, %s3519_s28, %s3520_s29  }
  0x17   :  { %s3521_s13 = smov [#allocation9]   ;;  %s3522_s15 = smov [#allocation3]  }
  0x18   :  { %s63_s14 = sshll.u32 %s3521_s13, 4  ;;  %s27_s16 = sshll.u32 %s3522_s15, 4  ;;  %s64_s14 = int_to_ptr.vmem [resolvable:$true] %s63_s14  ;;  %s28_s16 = int_to_ptr.vmem [resolvable:$true] %s27_s16 }
  0x19   :  { %s3400_s19 = scalar_lea.hbm %s3924_s3, 12288 }
  0x1a   :  { %p3401_p8 = scmp.ne.s32.totalorder %s3924_s3, %s3400_s19  ;;  %p3404_p9 = scmp.lt.u32.totalorder %s3400_s19, %s3924_s3 }
  0x1c   :  { %p3406_p10 = pnand %p3404_p9, %p3401_p8 }
  0x1e   :  { %3409 = shalt.err (!%p3406_p10)
}
  0x1f   :  { %s3410_s1 = scalar_lea.vmem %s64_s14, 12288  ;;  %p3415_p12 = scmp.lt.s32.totalorder %s64_s14, %s64_s14 }
  0x20   :  { %p3411_p11 = scmp.ne.s32.totalorder %s64_s14, %s3410_s1  ;;  %p3416_p13 = scmp.lt.s32.totalorder %s3410_s1, %s3410_s1 }
  0x22   :  { %p3417_p0 = por %p3416_p13, %p3415_p12 }
  0x24   :  { %p3418_p1 = pnand %p3417_p0, %p3411_p11 }
  0x26   :  { %3421 = shalt.err (!%p3418_p1)
}
  0x27   :  { %69 = dma.hbm_to_vmem [thread:$0]  %s3924_s3, 12288, %s64_s14, [#allocation10], %s3519_s28, %s3519_s28, %s3520_s29  }
  0x28   :  { %s3422_s10 = scalar_lea.hbm %s3921_s0, 1024 }
  0x29   :  { %p3423_p2 = scmp.ne.s32.totalorder %s3921_s0, %s3422_s10  ;;  %p3426_p3 = scmp.lt.u32.totalorder %s3422_s10, %s3921_s0 }
  0x2b   :  { %p3428_p4 = pnand %p3426_p3, %p3423_p2 }
  0x2d   :  { %3431 = shalt.err (!%p3428_p4)
}
  0x2e   :  { %s3432_s17 = scalar_lea.vmem %s28_s16, 1024  ;;  %p3437_p6 = scmp.lt.s32.totalorder %s28_s16, %s28_s16 }
  0x2f   :  { %p3433_p5 = scmp.ne.s32.totalorder %s28_s16, %s3432_s17  ;;  %p3438_p7 = scmp.lt.s32.totalorder %s3432_s17, %s3432_s17 }
  0x31   :  { %p3439_p8 = por %p3438_p7, %p3437_p6 }
  0x33   :  { %p3440_p9 = pnand %p3439_p8, %p3433_p5 }
  0x35   :  { %3443 = shalt.err (!%p3440_p9)
}
  0x36   :  { %s3523_s3 = smov 64   ;;  %s3524_s14 = smov 4  }
  0x37   :  { %33 = dma.hbm_to_vmem [thread:$0]  %s3921_s0, 1024, %s28_s16, [#allocation4], %s3523_s3, %s3523_s3, %s3524_s14  }
  0x38   :  { %s3525_s21 = smov [#allocation8]   ;;  %s3526_s23 = smov [#allocation11]  }
  0x39   :  { %s51_s22 = sshll.u32 %s3525_s21, 4  ;;  %s75_s24 = sshll.u32 %s3526_s23, 4  ;;  %s52_s22 = int_to_ptr.vmem [resolvable:$true] %s51_s22  ;;  %s76_s24 = int_to_ptr.vmem [resolvable:$true] %s75_s24 }
  0x3a   :  { %s3444_s25 = scalar_lea.hbm %s3923_s2, 12288 }
  0x3b   :  { %p3445_p10 = scmp.ne.s32.totalorder %s3923_s2, %s3444_s25  ;;  %p3448_p11 = scmp.lt.u32.totalorder %s3444_s25, %s3923_s2 }
  0x3d   :  { %p3450_p12 = pnand %p3448_p11, %p3445_p10 }
  0x3f   :  { %3453 = shalt.err (!%p3450_p12)
}
  0x40   :  { %s3454_s0 = scalar_lea.vmem %s52_s22, 12288  ;;  %p3459_p0 = scmp.lt.s32.totalorder %s52_s22, %s52_s22 }
  0x41   :  { %p3455_p13 = scmp.ne.s32.totalorder %s52_s22, %s3454_s0  ;;  %p3460_p1 = scmp.lt.s32.totalorder %s3454_s0, %s3454_s0 }
  0x43   :  { %p3461_p2 = por %p3460_p1, %p3459_p0 }
  0x45   :  { %p3462_p3 = pnand %p3461_p2, %p3455_p13 }
  0x47   :  { %3465 = shalt.err (!%p3462_p3)
}
  0x48   :  { %57 = dma.hbm_to_vmem [thread:$0]  %s3923_s2, 12288, %s52_s22, [#allocation7], %s3519_s28, %s3519_s28, %s3520_s29  }
  0x49   :  { %s3466_s17 = scalar_lea.hbm %s3925_s4, 12288 }
  0x4a   :  { %p3467_p4 = scmp.ne.s32.totalorder %s3925_s4, %s3466_s17  ;;  %p3470_p5 = scmp.lt.u32.totalorder %s3466_s17, %s3925_s4 }
  0x4c   :  { %p3472_p6 = pnand %p3470_p5, %p3467_p4 }
  0x4e   :  { %3475 = shalt.err (!%p3472_p6)
}
  0x4f   :  { %s3476_s21 = scalar_lea.vmem %s76_s24, 12288  ;;  %p3481_p8 = scmp.lt.s32.totalorder %s76_s24, %s76_s24 }
  0x50   :  { %p3477_p7 = scmp.ne.s32.totalorder %s76_s24, %s3476_s21  ;;  %p3482_p9 = scmp.lt.s32.totalorder %s3476_s21, %s3476_s21 }
  0x52   :  { %p3483_p10 = por %p3482_p9, %p3481_p8 }
  0x54   :  { %p3484_p11 = pnand %p3483_p10, %p3477_p7 }
  0x56   :  { %3487 = shalt.err (!%p3484_p11)
}
  0x57   :  { %81 = dma.hbm_to_vmem [thread:$0]  %s3925_s4, 12288, %s76_s24, [#allocation10], %s3519_s28, %s3519_s28, %s3520_s29  }
  0x58   :  { %3510 = dma.done.wait [#allocation4], 1024  }
  0x59   :  { %3511 = vsyncadd [#allocation4], 4294966272 }
  0x5a   :  { %3512 = dma.done.wait [#allocation7], 13056  }
  0x5b   :  { %3513 = vsyncadd [#allocation7], 4294954240 }
  0x5c   :  { %3514 = dma.done.wait [#allocation10], 24576  }
  0x5d   :  { %3515 = vsyncadd [#allocation10], 4294942720  ;;  %v3527_v1 = vmov 0   ;;  %v2974_v2 = vld [vmem:[#allocation6 + $0x24] ss:$8 sps:$4 sm:$0xff]   ;;  %vm166_vm0 = vcmask 130048   ;;  %v466_v63 = vlaneseq }
  0x5e   :  { %211 = vmatprep.mubr.bf16.mxu0 %v3527_v1  ;;  %2973 = vset.pattern.permute.xlu0 %v3527_v1  ;;  %v2976_v3 = vld [vmem:[#allocation6 + $0x20] ss:$8 sps:$4 sm:$0xff]   ;;  %v3667_v4 = vld [vmem:[#allocation3 + $0x4] sm:$0xf]  ;;  %v3669_v5 = vld [vmem:[#allocation3 + $0xc] sm:$0xf] }
  0x5f   :  { %179 = vmatprep.subr.bf16.mxu0 %v2974_v2  ;;  %v2606_v6 = vcombine.low %v3667_v4, %v3669_v5  ;;  %v2978_v7 = vld [vmem:[#allocation6 + $0x10] ss:$8 sps:$4 sm:$0xff]   ;;  %v2980_v8 = vld [vmem:[#allocation6 + $0x14] ss:$8 sps:$4 sm:$0xff]   ;;  %v3677_v11 = vld [vmem:[#allocation3 + $0x24] sm:$0xf]  ;;  %v127_v54 = vunpack.c.l.bf16 %v3667_v4 }
  0x60   :  { %180 = vmatpush1.bf16.msra.mxu0 %v2976_v3  ;;  %v3673_v9 = vld [vmem:[#allocation3 + $0x14] sm:$0xf]  ;;  %v3675_v10 = vld [vmem:[#allocation3 + $0x1c] sm:$0xf]  ;;  %v3679_v12 = vld [vmem:[#allocation3 + $0x2c] sm:$0xf] }
  0x61   :  { %v3681_v13 = vld [vmem:[#allocation3 + $0x34] sm:$0xf]  ;;  %v2622_v14 = vcombine.low %v3669_v5, %v3673_v9  ;;  %274 = vmatprep.subr.bf16.mxu0 %v2980_v8  ;;  %v2623_v15 = vcombine.low %v3675_v10, %v3677_v11  ;;  %v2987_v17 = vld [vmem:[#allocation6 + $0x4] ss:$8 sps:$4 sm:$0xff]   ;;  %v2607_v18 = vcombine.low %v3673_v9, %v3675_v10  ;;  %v2996_v20 = vld [vmem:[#allocation8] ss:$8 sps:$4 sm:$0xff]   ;;  %v2608_v24 = vcombine.low %v3677_v11, %v3679_v12 }
  0x62   :  { %v2624_v16 = vcombine.low %v3679_v12, %v3681_v13  ;;  %v2994_v19 = vld [vmem:[#allocation8 + $0x4] ss:$8 sps:$4 sm:$0xff]   ;;  %v2997_v21 = vld [vmem:[#allocation8 + $0x14] ss:$8 sps:$4 sm:$0xff]   ;;  %v2999_v22 = vld [vmem:[#allocation8 + $0x10] ss:$8 sps:$4 sm:$0xff]  }
  0x63   :  { %2612 = vmatmul.mubr.msk.bf16.vlgmr.msra.gmra.mrb[0].mxu0 %vm166_vm0, %v2606_v6  ;;  %1140 = vmatprep.subr.bf16.mxu1 %v2994_v19  ;;  %v3000_v23 = vld [vmem:[#allocation8 + $0x24] ss:$8 sps:$4 sm:$0xff]   ;;  %v3002_v25 = vld [vmem:[#allocation8 + $0x20] ss:$8 sps:$4 sm:$0xff]   ;;  %v3003_v26 = vld [vmem:[#allocation8 + $0x34] ss:$8 sps:$4 sm:$0xff]  }
  0x64   :  { %275 = vmatpush1.bf16.msra.mxu0 %v2978_v7  ;;  %221 = vmatprep.mubr.bf16.mxu0 %v3527_v1  ;;  %v3005_v27 = vld [vmem:[#allocation8 + $0x30] ss:$8 sps:$4 sm:$0xff]   ;;  %v125_v28 = vld [vmem:[#allocation3 + $0x3c] sm:$0xf]  ;;  %v3008_v31 = vld [vmem:[#allocation8 + $0x40] ss:$8 sps:$4 sm:$0xff]  }
  0x65   :  { %375 = vmatprep.subr.bf16.mxu0 %v2987_v17  ;;  %1141 = vmatpush1.bf16.msra.mxu1 %v2996_v20  ;;  %v3006_v29 = vld [vmem:[#allocation8 + $0x44] ss:$8 sps:$4 sm:$0xff]   ;;  %v2609_v30 = vcombine.low %v3681_v13, %v125_v28  ;;  %v3009_v32 = vld [vmem:[#allocation8 + $0x54] ss:$8 sps:$4 sm:$0xff]   ;;  %v3011_v33 = vld [vmem:[#allocation8 + $0x50] ss:$8 sps:$4 sm:$0xff]  }
  0x66   :  { %1142 = vmatprep.subr.bf16.mxu1 %v2997_v21  ;;  %v3012_v34 = vld [vmem:[#allocation8 + $0x64] ss:$8 sps:$4 sm:$0xff]   ;;  %v2984_v35 = vld [vmem:[#allocation3] ss:$8 sps:$4 sm:$0xff]   ;;  %v3014_v36 = vld [vmem:[#allocation8 + $0x60] ss:$8 sps:$4 sm:$0xff]  }
  0x67   :  { %v2985_v37 = vld [vmem:[#allocation6] ss:$8 sps:$4 sm:$0xff]   ;;  %v3015_v38 = vld [vmem:[#allocation8 + $0x74] ss:$8 sps:$4 sm:$0xff]   ;;  %v3018_v40 = vld [vmem:[#allocation8 + $0x84] ss:$8 sps:$4 sm:$0xff]  }
  0x68   :  { %v3017_v39 = vld [vmem:[#allocation8 + $0x70] ss:$8 sps:$4 sm:$0xff]   ;;  %v2988_v41 = vld [vmem:[#allocation3 + $0x10] ss:$8 sps:$4 sm:$0xff]   ;;  %v3021_v43 = vld [vmem:[#allocation8 + $0x94] ss:$8 sps:$4 sm:$0xff]  }
  0x69   :  { %1143 = vmatpush1.bf16.msra.mxu1 %v2999_v22  ;;  %v3020_v42 = vld [vmem:[#allocation8 + $0x80] ss:$8 sps:$4 sm:$0xff]   ;;  %v3023_v44 = vld [vmem:[#allocation8 + $0x90] ss:$8 sps:$4 sm:$0xff]   ;;  %v3024_v45 = vld [vmem:[#allocation8 + $0xa4] ss:$8 sps:$4 sm:$0xff]  }
  0x6a   :  { %1144 = vmatprep.subr.bf16.mxu1 %v3000_v23  ;;  %v2989_v46 = vld [vmem:[#allocation3 + $0x20] ss:$8 sps:$4 sm:$0xff]   ;;  %v3026_v47 = vld [vmem:[#allocation8 + $0xa0] ss:$8 sps:$4 sm:$0xff]   ;;  %v3027_v48 = vld [vmem:[#allocation8 + $0xb4] ss:$8 sps:$4 sm:$0xff]  }
  0x6b   :  { %2613 = vmatmul.mubr.msk.bf16.gmra.mrb[4].mxu0 %vm166_vm0, %v2607_v18  ;;  %v3029_v49 = vld [vmem:[#allocation8 + $0xb0] ss:$8 sps:$4 sm:$0xff]   ;;  %v3030_v50 = vld [vmem:[#allocation8 + $0xc4] ss:$8 sps:$4 sm:$0xff]   ;;  %v2990_v51 = vld [vmem:[#allocation3 + $0x30] ss:$8 sps:$4 sm:$0xff]  }
  0x6c   :  { %231 = vmatprep.mubr.bf16.mxu0 %v3527_v1  ;;  %v3032_v52 = vld [vmem:[#allocation8 + $0xc0] ss:$8 sps:$4 sm:$0xff]   ;;  %v3033_v53 = vld [vmem:[#allocation8 + $0xd4] ss:$8 sps:$4 sm:$0xff]   ;;  %v3528_v55 = vmov 0.0   ;;  %v3729_v0 = vshrl.u32 %v466_v63, 7 }
  0x6d   :  { %1145 = vmatpush1.bf16.msra.mxu1 %v3002_v25  ;;  %v349_v56 = vpack.c.bf16 %v127_v54, %v3528_v55  ;;  %v3035_v57 = vld [vmem:[#allocation8 + $0xd0] ss:$8 sps:$4 sm:$0xff]   ;;  %v3036_v58 = vld [vmem:[#allocation8 + $0xe4] ss:$8 sps:$4 sm:$0xff]   ;;  %v3038_v59 = vld [vmem:[#allocation8 + $0xe0] ss:$8 sps:$4 sm:$0xff]  }
  0x6e   :  { %1146 = vmatprep.subr.bf16.mxu1 %v3003_v26  ;;  %v3039_v60 = vld [vmem:[#allocation8 + $0xf4] ss:$8 sps:$4 sm:$0xff]   ;;  %v3041_v61 = vld [vmem:[#allocation8 + $0xf0] ss:$8 sps:$4 sm:$0xff]   ;;  %v3044_v62 = vld [vmem:[#allocation8 + $0x104] ss:$8 sps:$4 sm:$0xff]  }
  0x6f   :  { %v464_v2 = vld [vmem:[%s3926_s5] sm:$0x3]  ;;  %v3741_v4 = vsub.s32 1, %v3729_v0  ;;  %v3047_v28 = vld [vmem:[#allocation8 + $0x114] ss:$8 sps:$4 sm:$0xff]  }
  0x70   :  { %v3053_v54 = vld [vmem:[#allocation8 + $0x134] ss:$8 sps:$4 sm:$0xff]  }
  0x71   :  { %1147 = vmatpush1.bf16.msra.mxu1 %v3005_v27  ;;  %v3745_v8 = vrot.slane %v464_v2, %v3741_v4 }
  0x72   :  { %1148 = vmatprep.subr.bf16.mxu1 %v3006_v29 }
  0x73   :  { %2614 = vmatmul.mubr.msk.bf16.gmra.mrb[8].mxu0 %vm166_vm0, %v2608_v24  ;;  %v3042_v24 = vld [vmem:[#allocation8 + $0x100] ss:$8 sps:$4 sm:$0xff]  }
  0x74   :  { %241 = vmatprep.mubr.bf16.mxu0 %v3527_v1 }
  0x75   :  { %1149 = vmatpush1.bf16.msra.mxu1 %v3008_v31 }
  0x76   :  { %1150 = vmatprep.subr.bf16.mxu1 %v3009_v32 }
  0x79   :  { %1151 = vmatpush1.bf16.msra.mxu1 %v3011_v33 }
  0x7a   :  { %1152 = vmatprep.subr.bf16.mxu1 %v3012_v34 }
  0x7b   :  { %2615 = vmatmul.mubr.msk.bf16.gmra.mrb[12].mxu0 %vm166_vm0, %v2609_v30 }
  0x7c   :  { %306 = vmatprep.mubr.bf16.mxu0 %v3527_v1 }
  0x7d   :  { %1153 = vmatpush1.bf16.msra.mxu1 %v3014_v36 }
  0x7e   :  { %1154 = vmatprep.subr.bf16.mxu1 %v3015_v38 }
  0x81   :  { %1155 = vmatpush1.bf16.msra.mxu1 %v3017_v39 }
  0x82   :  { %1156 = vmatprep.subr.bf16.mxu1 %v3018_v40 }
  0x83   :  { %2618 = vmatmul.mubr.msk.bf16.vlgmr.msra.gmra.mrb[0].mxu0 %vm166_vm0, %v2984_v35 }
  0x84   :  { %376 = vmatpush1.bf16.msra.mxu0 %v2985_v37  ;;  %316 = vmatprep.mubr.bf16.mxu0 %v3527_v1  ;;  %v3045_v37 = vld [vmem:[#allocation8 + $0x110] ss:$8 sps:$4 sm:$0xff]  }
  0x85   :  { %1157 = vmatpush1.bf16.msra.mxu1 %v3020_v42 }
  0x86   :  { %1158 = vmatprep.subr.bf16.mxu1 %v3021_v43 }
  0x89   :  { %1159 = vmatpush1.bf16.msra.mxu1 %v3023_v44 }
  0x8a   :  { %1160 = vmatprep.subr.bf16.mxu1 %v3024_v45 }
  0x8b   :  { %2619 = vmatmul.mubr.msk.bf16.gmra.mrb[4].mxu0 %vm166_vm0, %v2988_v41  ;;  %v3050_v41 = vld [vmem:[#allocation8 + $0x124] ss:$8 sps:$4 sm:$0xff]  }
  0x8c   :  { %326 = vmatprep.mubr.bf16.mxu0 %v3527_v1 }
  0x8d   :  { %1161 = vmatpush1.bf16.msra.mxu1 %v3026_v47 }
  0x8e   :  { %1162 = vmatprep.subr.bf16.mxu1 %v3027_v48 }
  0x91   :  { %1163 = vmatpush1.bf16.msra.mxu1 %v3029_v49 }
  0x92   :  { %1164 = vmatprep.subr.bf16.mxu1 %v3030_v50 }
  0x93   :  { %2620 = vmatmul.mubr.msk.bf16.gmra.mrb[8].mxu0 %vm166_vm0, %v2989_v46 }
  0x94   :  { %336 = vmatprep.mubr.bf16.mxu0 %v3527_v1 }
  0x95   :  { %1165 = vmatpush1.bf16.msra.mxu1 %v3032_v52 }
  0x96   :  { %1166 = vmatprep.subr.bf16.mxu1 %v3033_v53 }
  0x99   :  { %1167 = vmatpush1.bf16.msra.mxu1 %v3035_v57 }
  0x9a   :  { %1168 = vmatprep.subr.bf16.mxu1 %v3036_v58 }
  0x9b   :  { %2621 = vmatmul.mubr.msk.bf16.gmra.mrb[12].mxu0 %vm166_vm0, %v2990_v51  ;;  %v3048_v51 = vld [vmem:[#allocation8 + $0x120] ss:$8 sps:$4 sm:$0xff]  }
  0x9c   :  { %407 = vmatprep.mubr.bf16.mxu0 %v3527_v1 }
  0x9d   :  { %1169 = vmatpush1.bf16.msra.mxu1 %v3038_v59  ;;  %v3051_v59 = vld [vmem:[#allocation8 + $0x130] ss:$8 sps:$4 sm:$0xff]  }
  0x9e   :  { %1170 = vmatprep.subr.bf16.mxu1 %v3039_v60  ;;  %v3138_v60 = vld [vmem:[#allocation9] ss:$8 sps:$4 sm:$0xff]  }
  0xa1   :  { %1171 = vmatpush1.bf16.msra.mxu1 %v3041_v61 }
  0xa2   :  { %1193 = vmatprep.subr.bf16.mxu1 %v3044_v62  ;;  %v3140_v62 = vld [vmem:[#allocation9 + $0x4] ss:$8 sps:$4 sm:$0xff]  }
  0xa3   :  { %2627 = vmatmul.mubr.msk.bf16.vlgmr.msra.gmra.mrb[0].mxu0 %vm166_vm0, %v349_v56  ;;  %1917 = vmatprep.subr.bf16.mxu0 %v3140_v62  ;;  %v3158_v62 = vld [vmem:[#allocation9 + $0x64] ss:$8 sps:$4 sm:$0xff]  }
  0xa4   :  { %417 = vmatprep.mubr.bf16.mxu0 %v3527_v1  ;;  %1918 = vmatpush1.bf16.msra.mxu0 %v3138_v60  ;;  %v3153_v60 = vld [vmem:[#allocation9 + $0x50] ss:$8 sps:$4 sm:$0xff]  }
  0xab   :  { %2628 = vmatmul.mubr.msk.bf16.gmra.mrb[4].mxu0 %vm166_vm0, %v2622_v14 }
  0xac   :  { %427 = vmatprep.mubr.bf16.mxu0 %v3527_v1 }
  0xb3   :  { %2629 = vmatmul.mubr.msk.bf16.gmra.mrb[8].mxu0 %vm166_vm0, %v2623_v15 }
  0xb4   :  { %437 = vmatprep.mubr.bf16.mxu0 %v3527_v1  ;;  %v3732_v1 = vsub.s32 0, %v3729_v0 }
  0xb6   :  { %v3738_v3 = vrot.slane %v464_v2, %v3732_v1 }
  0xbb   :  { %2630 = vmatmul.mubr.msk.bf16.gmra.mrb[12].mxu0 %vm166_vm0, %v2624_v16 }
 0x176   :  { %v409_v5 = vpop.f32.mrb[0].mxu0 }
 0x177   :  { %v476_v6 = vadd.f32 %v3738_v3, %v409_v5  ;;  %v411_v7 = vpop.f32.mrb[1].mxu0  ;;  %v3056_v5 = vld [vmem:[#allocation8 + $0x144] ss:$8 sps:$4 sm:$0xff]  }
 0x178   :  { %v413_v9 = vpop.f32.mrb[2].mxu0  ;;  %v477_v13 = vadd.f32 %v3745_v8, %v411_v7  ;;  %v3143_v7 = vld [vmem:[#allocation9 + $0x14] ss:$8 sps:$4 sm:$0xff]  }
 0x179   :  { %v478_v10 = vadd.f32 %v3738_v3, %v413_v9  ;;  %v415_v11 = vpop.f32.mrb[3].mxu0  ;;  %v508_v17 = vmul.f32 0.2, %v476_v6  ;;  %vm492_vm3 = vcmp.gt.f32.partialorder %v476_v6, 0.0  ;;  %1919 = vmatprep.subr.bf16.mxu0 %v3143_v7  ;;  %v3069_v7 = vld [vmem:[#allocation8 + $0x190] ss:$8 sps:$4 sm:$0xff]  }
 0x17a   :  { %v479_v12 = vadd.f32 %v3745_v8, %v415_v11  ;;  %v509_v20 = vmul.f32 0.2, %v477_v13  ;;  %vm493_vm4 = vcmp.gt.f32.partialorder %v477_v13, 0.0 }
 0x17b   :  { %vm494_vm1 = vcmp.gt.f32.partialorder %v478_v10, 0.0  ;;  %v510_v14 = vmul.f32 0.2, %v478_v10  ;;  %v3762_v32 = vsel %vm492_vm3, %v476_v6, %v508_v17 }
 0x17c   :  { %v511_v15 = vmul.f32 0.2, %v479_v12  ;;  %vm495_vm2 = vcmp.gt.f32.partialorder %v479_v12, 0.0  ;;  %v3768_v38 = vsel %vm493_vm4, %v477_v13, %v509_v20  ;;  %v3141_v13 = vld [vmem:[#allocation9 + $0x10] ss:$8 sps:$4 sm:$0xff]  }
 0x17d   :  { %v3750_v16 = vsel %vm494_vm1, %v478_v10, %v510_v14  ;;  %v3054_v20 = vld [vmem:[#allocation8 + $0x140] ss:$8 sps:$4 sm:$0xff]   ;;  %1920 = vmatpush1.bf16.msra.mxu0 %v3141_v13 }
 0x17e   :  { %v419_v18 = vpop.f32.mrb[4].mxu0  ;;  %v3752_v19 = vsel %vm495_vm2, %v479_v12, %v511_v15  ;;  %v636_v27 = vpack.c.bf16 %v3750_v16, %v3528_v55  ;;  %v3072_v13 = vld [vmem:[#allocation8 + $0x1a0] ss:$8 sps:$4 sm:$0xff]  }
 0x17f   :  { %v480_v21 = vadd.f32 %v3738_v3, %v419_v18  ;;  %v421_v22 = vpop.f32.mrb[5].mxu0  ;;  %v637_v23 = vpack.c.bf16 %v3752_v19, %v3528_v55 }
 0x180   :  { %v481_v25 = vadd.f32 %v3745_v8, %v421_v22  ;;  %v423_v26 = vpop.f32.mrb[6].mxu0 }
 0x181   :  { %vm496_vm5 = vcmp.gt.f32.partialorder %v480_v21, 0.0  ;;  %v512_v29 = vmul.f32 0.2, %v480_v21  ;;  %v482_v30 = vadd.f32 %v3738_v3, %v423_v26  ;;  %v425_v31 = vpop.f32.mrb[7].mxu0  ;;  %1172 = vmatprep.mubr.bf16.mxu1 %v637_v23  ;;  %v3059_v23 = vld [vmem:[#allocation8 + $0x154] ss:$8 sps:$4 sm:$0xff]  }
 0x182   :  { %vm497_vm6 = vcmp.gt.f32.partialorder %v481_v25, 0.0  ;;  %v513_v33 = vmul.f32 0.2, %v481_v25  ;;  %v483_v34 = vadd.f32 %v3745_v8, %v425_v31  ;;  %1173 = vmatmul.mubr.bf16.vlgmr.msra.gmra.mrb[0].mxu1 %v636_v27 }
 0x183   :  { %v3765_v35 = vsel %vm496_vm5, %v480_v21, %v512_v29  ;;  %vm498_vm7 = vcmp.gt.f32.partialorder %v482_v30, 0.0  ;;  %v514_v36 = vmul.f32 0.2, %v482_v30  ;;  %1194 = vmatpush1.bf16.msra.mxu1 %v3042_v24  ;;  %v3146_v24 = vld [vmem:[#allocation9 + $0x24] ss:$8 sps:$4 sm:$0xff]  }
 0x184   :  { %v638_v39 = vpack.c.bf16 %v3765_v35, %v3762_v32  ;;  %vm499_vm8 = vcmp.gt.f32.partialorder %v483_v34, 0.0  ;;  %v515_v40 = vmul.f32 0.2, %v483_v34  ;;  %1195 = vmatprep.subr.bf16.mxu1 %v3047_v28  ;;  %v3772_v42 = vsel %vm497_vm6, %v481_v25, %v513_v33  ;;  %v3057_v28 = vld [vmem:[#allocation8 + $0x150] ss:$8 sps:$4 sm:$0xff]   ;;  %1921 = vmatprep.subr.bf16.mxu0 %v3146_v24 }
 0x185   :  { %v3774_v43 = vsel %vm498_vm7, %v482_v30, %v514_v36  ;;  %v639_v44 = vpack.c.bf16 %v3772_v42, %v3768_v38  ;;  %v3144_v33 = vld [vmem:[#allocation9 + $0x20] ss:$8 sps:$4 sm:$0xff]   ;;  %v3170_v24 = vld [vmem:[#allocation9 + $0xa4] ss:$8 sps:$4 sm:$0xff]   ;;  %v3099_v32 = vld [vmem:[#allocation8 + $0x230] ss:$8 sps:$4 sm:$0xff]  }
 0x186   :  { %v3778_v45 = vsel %vm499_vm8, %v483_v34, %v515_v40  ;;  %v429_v46 = vpop.f32.mrb[8].mxu0  ;;  %v640_v47 = vpack.c.bf16 %v3774_v43, %v3750_v16  ;;  %v3062_v40 = vld [vmem:[#allocation8 + $0x164] ss:$8 sps:$4 sm:$0xff]   ;;  %1922 = vmatpush1.bf16.msra.mxu0 %v3144_v33  ;;  %v3084_v33 = vld [vmem:[#allocation8 + $0x1e0] ss:$8 sps:$4 sm:$0xff]  }
 0x187   :  { %v641_v48 = vpack.c.bf16 %v3778_v45, %v3752_v19  ;;  %v484_v49 = vadd.f32 %v3738_v3, %v429_v46  ;;  %1196 = vmatpush1.bf16.msra.mxu1 %v3045_v37  ;;  %v431_v50 = vpop.f32.mrb[9].mxu0  ;;  %v3104_v35 = vld [vmem:[#allocation8 + $0x244] ss:$8 sps:$4 sm:$0xff]  }
 0x188   :  { %v485_v52 = vadd.f32 %v3745_v8, %v431_v50  ;;  %v433_v53 = vpop.f32.mrb[10].mxu0  ;;  %1197 = vmatprep.subr.bf16.mxu1 %v3050_v41  ;;  %v3147_v50 = vld [vmem:[#allocation9 + $0x30] ss:$8 sps:$4 sm:$0xff]   ;;  %v3116_v19 = vld [vmem:[#allocation8 + $0x284] ss:$8 sps:$4 sm:$0xff]  }
 0x189   :  { %v486_v56 = vadd.f32 %v3738_v3, %v433_v53  ;;  %v435_v57 = vpop.f32.mrb[11].mxu0  ;;  %v516_v9 = vmul.f32 0.2, %v484_v49  ;;  %vm500_vm11 = vcmp.gt.f32.partialorder %v484_v49, 0.0  ;;  %v3152_v53 = vld [vmem:[#allocation9 + $0x44] ss:$8 sps:$4 sm:$0xff]  }
 0x18a   :  { %v487_v58 = vadd.f32 %v3745_v8, %v435_v57  ;;  %v517_v14 = vmul.f32 0.2, %v485_v52  ;;  %vm501_vm12 = vcmp.gt.f32.partialorder %v485_v52, 0.0  ;;  %v3063_v57 = vld [vmem:[#allocation8 + $0x170] ss:$8 sps:$4 sm:$0xff]  }
 0x18b   :  { %vm502_vm9 = vcmp.gt.f32.partialorder %v486_v56, 0.0  ;;  %v518_v61 = vmul.f32 0.2, %v486_v56  ;;  %1198 = vmatpush1.bf16.msra.mxu1 %v3048_v51  ;;  %v3801_v31 = vsel %vm500_vm11, %v484_v49, %v516_v9  ;;  %v3060_v51 = vld [vmem:[#allocation8 + $0x160] ss:$8 sps:$4 sm:$0xff]  }
 0x18c   :  { %vm503_vm10 = vcmp.gt.f32.partialorder %v487_v58, 0.0  ;;  %v519_v2 = vmul.f32 0.2, %v487_v58  ;;  %1199 = vmatprep.subr.bf16.mxu1 %v3053_v54  ;;  %v3065_v54 = vld [vmem:[#allocation8 + $0x174] ss:$8 sps:$4 sm:$0xff]  }
 0x18d   :  { %v3788_v6 = vsel %vm502_vm9, %v486_v56, %v518_v61  ;;  %v3150_v56 = vld [vmem:[#allocation9 + $0x40] ss:$8 sps:$4 sm:$0xff]   ;;  %v3161_v9 = vld [vmem:[#allocation9 + $0x74] ss:$8 sps:$4 sm:$0xff]   ;;  %v648_v16 = vld [vmem:[%s3927_s6] sm:$0x3] }
 0x18e   :  { %v439_v10 = vpop.f32.mrb[12].mxu0  ;;  %v3790_v11 = vsel %vm503_vm10, %v487_v58, %v519_v2  ;;  %v642_v12 = vpack.c.bf16 %v3788_v6, %v3774_v43  ;;  %v3155_v58 = vld [vmem:[#allocation9 + $0x54] ss:$8 sps:$4 sm:$0xff]   ;;  %v3066_v61 = vld [vmem:[#allocation8 + $0x180] ss:$8 sps:$4 sm:$0xff]   ;;  %v653_v43 = vrot.slane %v648_v16, %v3732_v1 }
 0x18f   :  { %v488_v15 = vadd.f32 %v3738_v3, %v439_v10  ;;  %1200 = vmatpush1.bf16.msra.mxu1 %v3051_v59  ;;  %v441_v17 = vpop.f32.mrb[13].mxu0  ;;  %v643_v18 = vpack.c.bf16 %v3790_v11, %v3778_v45  ;;  %v3068_v59 = vld [vmem:[#allocation8 + $0x184] ss:$8 sps:$4 sm:$0xff]   ;;  %v3071_v2 = vld [vmem:[#allocation8 + $0x194] ss:$8 sps:$4 sm:$0xff]  }
 0x190   :  { %v489_v21 = vadd.f32 %v3745_v8, %v441_v17  ;;  %v443_v22 = vpop.f32.mrb[14].mxu0  ;;  %1201 = vmatprep.subr.bf16.mxu1 %v3056_v5  ;;  %v3156_v5 = vld [vmem:[#allocation9 + $0x60] ss:$8 sps:$4 sm:$0xff]   ;;  %v3074_v10 = vld [vmem:[#allocation8 + $0x1a4] ss:$8 sps:$4 sm:$0xff]  }
 0x191   :  { %vm504_vm13 = vcmp.gt.f32.partialorder %v488_v15, 0.0  ;;  %v520_v25 = vmul.f32 0.2, %v488_v15  ;;  %v490_v26 = vadd.f32 %v3738_v3, %v443_v22  ;;  %v445_v27 = vpop.f32.mrb[15].mxu0  ;;  %1182 = vmatprep.mubr.bf16.mxu1 %v643_v18  ;;  %v3807_v3 = vsel %vm501_vm12, %v485_v52, %v517_v14  ;;  %v3164_v14 = vld [vmem:[#allocation9 + $0x84] ss:$8 sps:$4 sm:$0xff]  }
 0x192   :  { %vm505_vm14 = vcmp.gt.f32.partialorder %v489_v21, 0.0  ;;  %v521_v29 = vmul.f32 0.2, %v489_v21  ;;  %v491_v30 = vadd.f32 %v3745_v8, %v445_v27  ;;  %1183 = vmatmul.mubr.bf16.gmra.mrb[4].mxu1 %v642_v12  ;;  %v3149_v8 = vld [vmem:[#allocation9 + $0x34] ss:$8 sps:$4 sm:$0xff]  }
 0x193   :  { %vm506_vm15 = vcmp.gt.f32.partialorder %v490_v26, 0.0  ;;  %v522_v34 = vmul.f32 0.2, %v490_v26  ;;  %1202 = vmatpush1.bf16.msra.mxu1 %v3054_v20  ;;  %1225 = vmatprep.mubr.bf16.mxu1 %v639_v44  ;;  %v3810_v36 = vsel %vm504_vm13, %v488_v15, %v520_v25  ;;  %v3159_v12 = vld [vmem:[#allocation9 + $0x70] ss:$8 sps:$4 sm:$0xff]  }
 0x194   :  { %vm507_vm0 = vcmp.gt.f32.partialorder %v491_v30, 0.0  ;;  %v523_v37 = vmul.f32 0.2, %v491_v30  ;;  %1203 = vmatprep.subr.bf16.mxu1 %v3059_v23  ;;  %v3813_v41 = vsel %vm505_vm14, %v489_v21, %v521_v29  ;;  %v644_v46 = vpack.c.bf16 %v3810_v36, %v3801_v31  ;;  %1923 = vmatprep.subr.bf16.mxu0 %v3149_v8  ;;  %v3077_v15 = vld [vmem:[#allocation8 + $0x1b4] ss:$8 sps:$4 sm:$0xff]  }
 0x195   :  { %v645_v38 = vpack.c.bf16 %v3813_v41, %v3807_v3  ;;  %v3819_v42 = vsel %vm506_vm15, %v490_v26, %v522_v34  ;;  %1924 = vmatpush1.bf16.msra.mxu0 %v3147_v50  ;;  %v3162_v17 = vld [vmem:[#allocation9 + $0x80] ss:$8 sps:$4 sm:$0xff]   ;;  %v3075_v18 = vld [vmem:[#allocation8 + $0x1b0] ss:$8 sps:$4 sm:$0xff]   ;;  %v3167_v20 = vld [vmem:[#allocation9 + $0x94] ss:$8 sps:$4 sm:$0xff]  }
 0x196   :  { %v3821_v44 = vsel %vm507_vm0, %v491_v30, %v523_v37  ;;  %v646_v49 = vpack.c.bf16 %v3819_v42, %v3788_v6  ;;  %1925 = vmatprep.subr.bf16.mxu0 %v3152_v53  ;;  %v3080_v21 = vld [vmem:[#allocation8 + $0x1c4] ss:$8 sps:$4 sm:$0xff]   ;;  %v3165_v22 = vld [vmem:[#allocation9 + $0x90] ss:$8 sps:$4 sm:$0xff]   ;;  %v3078_v23 = vld [vmem:[#allocation8 + $0x1c0] ss:$8 sps:$4 sm:$0xff]   ;;  %v657_v6 = vrot.slane %v648_v16, %v3741_v4 }
 0x197   :  { %1204 = vmatpush1.bf16.msra.mxu1 %v3057_v28  ;;  %v647_v52 = vpack.c.bf16 %v3821_v44, %v3790_v11  ;;  %v3083_v25 = vld [vmem:[#allocation8 + $0x1d4] ss:$8 sps:$4 sm:$0xff]   ;;  %v3168_v26 = vld [vmem:[#allocation9 + $0xa0] ss:$8 sps:$4 sm:$0xff]   ;;  %v3081_v27 = vld [vmem:[#allocation8 + $0x1d0] ss:$8 sps:$4 sm:$0xff]  }
 0x198   :  { %1205 = vmatprep.subr.bf16.mxu1 %v3062_v40  ;;  %v3173_v28 = vld [vmem:[#allocation9 + $0xb4] ss:$8 sps:$4 sm:$0xff]   ;;  %v3086_v29 = vld [vmem:[#allocation8 + $0x1e4] ss:$8 sps:$4 sm:$0xff]   ;;  %v3171_v30 = vld [vmem:[#allocation9 + $0xb0] ss:$8 sps:$4 sm:$0xff]  }
 0x199   :  { %1926 = vmatpush1.bf16.msra.mxu0 %v3150_v56  ;;  %v3176_v34 = vld [vmem:[#allocation9 + $0xc4] ss:$8 sps:$4 sm:$0xff]   ;;  %v3089_v8 = vld [vmem:[#allocation8 + $0x1f4] ss:$8 sps:$4 sm:$0xff]   ;;  %v3174_v37 = vld [vmem:[#allocation9 + $0xc0] ss:$8 sps:$4 sm:$0xff]  }
 0x19a   :  { %1927 = vmatprep.subr.bf16.mxu0 %v3155_v58  ;;  %v3087_v40 = vld [vmem:[#allocation8 + $0x1f0] ss:$8 sps:$4 sm:$0xff]   ;;  %v3179_v50 = vld [vmem:[#allocation9 + $0xd4] ss:$8 sps:$4 sm:$0xff]   ;;  %v3098_v58 = vld [vmem:[#allocation8 + $0x224] ss:$8 sps:$4 sm:$0xff]  }
 0x19b   :  { %1206 = vmatpush1.bf16.msra.mxu1 %v3060_v51  ;;  %v3092_v51 = vld [vmem:[#allocation8 + $0x204] ss:$8 sps:$4 sm:$0xff]   ;;  %v3177_v53 = vld [vmem:[#allocation9 + $0xd0] ss:$8 sps:$4 sm:$0xff]   ;;  %v3095_v56 = vld [vmem:[#allocation8 + $0x214] ss:$8 sps:$4 sm:$0xff]  }
 0x19c   :  { %1207 = vmatprep.subr.bf16.mxu1 %v3065_v54  ;;  %v3090_v54 = vld [vmem:[#allocation8 + $0x200] ss:$8 sps:$4 sm:$0xff]   ;;  %v3107_v3 = vld [vmem:[#allocation8 + $0x254] ss:$8 sps:$4 sm:$0xff]   ;;  %v3105_v41 = vld [vmem:[#allocation8 + $0x250] ss:$8 sps:$4 sm:$0xff]  }
 0x19d   :  { %1928 = vmatpush1.bf16.msra.mxu0 %v3153_v60  ;;  %v3101_v60 = vld [vmem:[#allocation8 + $0x234] ss:$8 sps:$4 sm:$0xff]   ;;  %v3111_v36 = vld [vmem:[#allocation8 + $0x270] ss:$8 sps:$4 sm:$0xff]   ;;  %v3114_v45 = vld [vmem:[#allocation8 + $0x280] ss:$8 sps:$4 sm:$0xff]  }
 0x19e   :  { %1929 = vmatprep.subr.bf16.mxu0 %v3158_v62  ;;  %v3113_v31 = vld [vmem:[#allocation8 + $0x274] ss:$8 sps:$4 sm:$0xff]   ;;  %v3122_v62 = vld [vmem:[#allocation8 + $0x2a4] ss:$8 sps:$4 sm:$0xff]   ;;  %v3294_v16 = vld [vmem:[#allocation11 + $0x140] ss:$8 sps:$4 sm:$0xff]  }
 0x19f   :  { %1208 = vmatpush1.bf16.msra.mxu1 %v3063_v57  ;;  %v3093_v57 = vld [vmem:[#allocation8 + $0x210] ss:$8 sps:$4 sm:$0xff]   ;;  %vm2583_vm15 = vcmask 57344  }
 0x1a0   :  { %1209 = vmatprep.subr.bf16.mxu1 %v3068_v59  ;;  %v3096_v59 = vld [vmem:[#allocation8 + $0x220] ss:$8 sps:$4 sm:$0xff]  }
 0x1a1   :  { %1930 = vmatpush1.bf16.msra.mxu0 %v3156_v5  ;;  %v3125_v5 = vld [vmem:[#allocation8 + $0x2b4] ss:$8 sps:$4 sm:$0xff]  }
 0x1a2   :  { %1931 = vmatprep.subr.bf16.mxu0 %v3161_v9  ;;  %v3128_v9 = vld [vmem:[#allocation8 + $0x2c4] ss:$8 sps:$4 sm:$0xff]  }
 0x1a3   :  { %1210 = vmatpush1.bf16.msra.mxu1 %v3066_v61  ;;  %v3108_v61 = vld [vmem:[#allocation8 + $0x260] ss:$8 sps:$4 sm:$0xff]  }
 0x1a4   :  { %1211 = vmatprep.subr.bf16.mxu1 %v3071_v2  ;;  %v3120_v2 = vld [vmem:[#allocation8 + $0x2a0] ss:$8 sps:$4 sm:$0xff]  }
 0x1a5   :  { %1932 = vmatpush1.bf16.msra.mxu0 %v3159_v12  ;;  %v3131_v12 = vld [vmem:[#allocation8 + $0x2d4] ss:$8 sps:$4 sm:$0xff]  }
 0x1a6   :  { %1933 = vmatprep.subr.bf16.mxu0 %v3164_v14  ;;  %v3134_v14 = vld [vmem:[#allocation8 + $0x2e4] ss:$8 sps:$4 sm:$0xff]  }
 0x1a7   :  { %1212 = vmatpush1.bf16.msra.mxu1 %v3069_v7  ;;  %v3123_v7 = vld [vmem:[#allocation8 + $0x2b0] ss:$8 sps:$4 sm:$0xff]  }
 0x1a8   :  { %1213 = vmatprep.subr.bf16.mxu1 %v3074_v10  ;;  %v3126_v10 = vld [vmem:[#allocation8 + $0x2c0] ss:$8 sps:$4 sm:$0xff]  }
 0x1a9   :  { %1934 = vmatpush1.bf16.msra.mxu0 %v3162_v17  ;;  %v3137_v17 = vld [vmem:[#allocation8 + $0x2f4] ss:$8 sps:$4 sm:$0xff]  }
 0x1aa   :  { %1935 = vmatprep.subr.bf16.mxu0 %v3167_v20  ;;  %v3182_v20 = vld [vmem:[#allocation9 + $0xe4] ss:$8 sps:$4 sm:$0xff]  }
 0x1ab   :  { %1214 = vmatpush1.bf16.msra.mxu1 %v3072_v13  ;;  %v3129_v13 = vld [vmem:[#allocation8 + $0x2d0] ss:$8 sps:$4 sm:$0xff]  }
 0x1ac   :  { %1215 = vmatprep.subr.bf16.mxu1 %v3077_v15  ;;  %v3132_v15 = vld [vmem:[#allocation8 + $0x2e0] ss:$8 sps:$4 sm:$0xff]  }
 0x1ad   :  { %1936 = vmatpush1.bf16.msra.mxu0 %v3165_v22  ;;  %v3185_v22 = vld [vmem:[#allocation9 + $0xf4] ss:$8 sps:$4 sm:$0xff]  }
 0x1ae   :  { %1937 = vmatprep.subr.bf16.mxu0 %v3170_v24  ;;  %v3188_v24 = vld [vmem:[#allocation9 + $0x104] ss:$8 sps:$4 sm:$0xff]  }
 0x1af   :  { %1216 = vmatpush1.bf16.msra.mxu1 %v3075_v18  ;;  %v3135_v18 = vld [vmem:[#allocation8 + $0x2f0] ss:$8 sps:$4 sm:$0xff]  }
 0x1b0   :  { %1217 = vmatprep.subr.bf16.mxu1 %v3080_v21  ;;  %v3180_v21 = vld [vmem:[#allocation9 + $0xe0] ss:$8 sps:$4 sm:$0xff]  }
 0x1b1   :  { %1938 = vmatpush1.bf16.msra.mxu0 %v3168_v26 }
 0x1b2   :  { %1939 = vmatprep.subr.bf16.mxu0 %v3173_v28 }
 0x1b3   :  { %1218 = vmatpush1.bf16.msra.mxu1 %v3078_v23  ;;  %v3183_v23 = vld [vmem:[#allocation9 + $0xf0] ss:$8 sps:$4 sm:$0xff]  }
 0x1b4   :  { %1219 = vmatprep.subr.bf16.mxu1 %v3083_v25 }
 0x1b5   :  { %1940 = vmatpush1.bf16.msra.mxu0 %v3171_v30 }
 0x1b6   :  { %1941 = vmatprep.subr.bf16.mxu0 %v3176_v34 }
 0x1b7   :  { %1220 = vmatpush1.bf16.msra.mxu1 %v3081_v27 }
 0x1b8   :  { %1221 = vmatprep.subr.bf16.mxu1 %v3086_v29 }
 0x1b9   :  { %1942 = vmatpush1.bf16.msra.mxu0 %v3174_v37 }
 0x1ba   :  { %1943 = vmatprep.subr.bf16.mxu0 %v3179_v50 }
 0x1bb   :  { %1222 = vmatpush1.bf16.msra.mxu1 %v3084_v33 }
 0x1bc   :  { %1223 = vmatprep.subr.bf16.mxu1 %v3089_v8 }
 0x1bd   :  { %1944 = vmatpush1.bf16.msra.mxu0 %v3177_v53 }
 0x1be   :  { %1945 = vmatprep.subr.bf16.mxu0 %v3182_v20  ;;  %v3200_v20 = vld [vmem:[#allocation9 + $0x144] ss:$8 sps:$4 sm:$0xff]  }
 0x1bf   :  { %1224 = vmatpush1.bf16.msra.mxu1 %v3087_v40 }
 0x1c0   :  { %1246 = vmatprep.subr.bf16.mxu1 %v3092_v51  ;;  %v3186_v51 = vld [vmem:[#allocation9 + $0x100] ss:$8 sps:$4 sm:$0xff]  }
 0x1c1   :  { %1946 = vmatpush1.bf16.msra.mxu0 %v3180_v21  ;;  %v3291_v21 = vld [vmem:[#allocation11 + $0x130] ss:$8 sps:$4 sm:$0xff]  }
 0x1c2   :  { %1226 = vmatmul.mubr.bf16.vlgmr.msra.gmra.mrb[0].mxu1 %v638_v39  ;;  %v3102_v39 = vld [vmem:[#allocation8 + $0x240] ss:$8 sps:$4 sm:$0xff]   ;;  %1947 = vmatprep.subr.bf16.mxu0 %v3185_v22 }
 0x1c3   :  { %1235 = vmatprep.mubr.bf16.mxu1 %v645_v38  ;;  %1247 = vmatpush1.bf16.msra.mxu1 %v3090_v54  ;;  %v3110_v38 = vld [vmem:[#allocation8 + $0x264] ss:$8 sps:$4 sm:$0xff]   ;;  %v3198_v22 = vld [vmem:[#allocation9 + $0x140] ss:$8 sps:$4 sm:$0xff]  }
 0x1c4   :  { %1248 = vmatprep.subr.bf16.mxu1 %v3095_v56 }
 0x1c5   :  { %1948 = vmatpush1.bf16.msra.mxu0 %v3183_v23  ;;  %v3296_v23 = vld [vmem:[#allocation11 + $0x144] ss:$8 sps:$4 sm:$0xff]  }
 0x1c6   :  { %1960 = vmatprep.subr.bf16.mxu0 %v3188_v24  ;;  %v3203_v24 = vld [vmem:[#allocation9 + $0x154] ss:$8 sps:$4 sm:$0xff]  }
 0x1c7   :  { %1249 = vmatpush1.bf16.msra.mxu1 %v3093_v57  ;;  %v3191_v57 = vld [vmem:[#allocation9 + $0x114] ss:$8 sps:$4 sm:$0xff]  }
 0x1c8   :  { %1250 = vmatprep.subr.bf16.mxu1 %v3098_v58 }
 0x1ca   :  { %1236 = vmatmul.mubr.bf16.gmra.mrb[4].mxu1 %v644_v46  ;;  %v3117_v46 = vld [vmem:[#allocation8 + $0x290] ss:$8 sps:$4 sm:$0xff]  }
 0x1cb   :  { %1251 = vmatpush1.bf16.msra.mxu1 %v3096_v59  ;;  %1278 = vmatprep.mubr.bf16.mxu1 %v641_v48  ;;  %v3119_v48 = vld [vmem:[#allocation8 + $0x294] ss:$8 sps:$4 sm:$0xff]  }
 0x1cc   :  { %1252 = vmatprep.subr.bf16.mxu1 %v3101_v60 }
 0x1cf   :  { %1253 = vmatpush1.bf16.msra.mxu1 %v3099_v32  ;;  %v3189_v32 = vld [vmem:[#allocation9 + $0x110] ss:$8 sps:$4 sm:$0xff]  }
 0x1d0   :  { %1254 = vmatprep.subr.bf16.mxu1 %v3104_v35 }
 0x1d3   :  { %1255 = vmatpush1.bf16.msra.mxu1 %v3102_v39 }
 0x1d4   :  { %1256 = vmatprep.subr.bf16.mxu1 %v3107_v3 }
 0x1d7   :  { %1257 = vmatpush1.bf16.msra.mxu1 %v3105_v41  ;;  %v3282_v41 = vld [vmem:[#allocation11 + $0x100] ss:$8 sps:$4 sm:$0xff]  }
 0x1d8   :  { %1258 = vmatprep.subr.bf16.mxu1 %v3110_v38 }
 0x1db   :  { %1259 = vmatpush1.bf16.msra.mxu1 %v3108_v61 }
 0x1dc   :  { %1260 = vmatprep.subr.bf16.mxu1 %v3113_v31  ;;  %v3284_v31 = vld [vmem:[#allocation11 + $0x104] ss:$8 sps:$4 sm:$0xff]  }
 0x1df   :  { %1261 = vmatpush1.bf16.msra.mxu1 %v3111_v36 }
 0x1e0   :  { %1262 = vmatprep.subr.bf16.mxu1 %v3116_v19 }
 0x1e3   :  { %1263 = vmatpush1.bf16.msra.mxu1 %v3114_v45 }
 0x1e4   :  { %1264 = vmatprep.subr.bf16.mxu1 %v3119_v48  ;;  %v3194_v48 = vld [vmem:[#allocation9 + $0x124] ss:$8 sps:$4 sm:$0xff]  }
 0x1e7   :  { %1265 = vmatpush1.bf16.msra.mxu1 %v3117_v46 }
 0x1e8   :  { %1266 = vmatprep.subr.bf16.mxu1 %v3122_v62 }
 0x1eb   :  { %1267 = vmatpush1.bf16.msra.mxu1 %v3120_v2  ;;  %v3287_v2 = vld [vmem:[#allocation11 + $0x114] ss:$8 sps:$4 sm:$0xff]  }
 0x1ec   :  { %1268 = vmatprep.subr.bf16.mxu1 %v3125_v5 }
 0x1ef   :  { %1269 = vmatpush1.bf16.msra.mxu1 %v3123_v7 }
 0x1f0   :  { %1270 = vmatprep.subr.bf16.mxu1 %v3128_v9  ;;  %v3285_v9 = vld [vmem:[#allocation11 + $0x110] ss:$8 sps:$4 sm:$0xff]  }
 0x1f3   :  { %1271 = vmatpush1.bf16.msra.mxu1 %v3126_v10  ;;  %v3192_v10 = vld [vmem:[#allocation9 + $0x120] ss:$8 sps:$4 sm:$0xff]  }
 0x1f4   :  { %1272 = vmatprep.subr.bf16.mxu1 %v3131_v12 }
 0x1f7   :  { %1273 = vmatpush1.bf16.msra.mxu1 %v3129_v13  ;;  %v3290_v13 = vld [vmem:[#allocation11 + $0x124] ss:$8 sps:$4 sm:$0xff]  }
 0x1f8   :  { %1274 = vmatprep.subr.bf16.mxu1 %v3134_v14  ;;  %v3197_v14 = vld [vmem:[#allocation9 + $0x134] ss:$8 sps:$4 sm:$0xff]  }
 0x1fb   :  { %1275 = vmatpush1.bf16.msra.mxu1 %v3132_v15  ;;  %v3288_v15 = vld [vmem:[#allocation11 + $0x120] ss:$8 sps:$4 sm:$0xff]  }
 0x1fc   :  { %1276 = vmatprep.subr.bf16.mxu1 %v3137_v17  ;;  %v3195_v17 = vld [vmem:[#allocation9 + $0x130] ss:$8 sps:$4 sm:$0xff]  }
 0x1ff   :  { %1277 = vmatpush1.bf16.msra.mxu1 %v3135_v18  ;;  %v3293_v18 = vld [vmem:[#allocation11 + $0x134] ss:$8 sps:$4 sm:$0xff]  }
 0x200   :  { %2458 = vmatprep.subr.bf16.mxu1 %v3284_v31  ;;  %v3225_v31 = vld [vmem:[#allocation9 + $0x1d0] ss:$8 sps:$4 sm:$0xff]  }
 0x202   :  { %1279 = vmatmul.mubr.bf16.vlgmr.msra.gmra.mrb[0].mxu1 %v640_v47 }
 0x203   :  { %1288 = vmatprep.mubr.bf16.mxu1 %v647_v52  ;;  %2459 = vmatpush1.bf16.msra.mxu1 %v3282_v41  ;;  %v3320_v41 = vld [vmem:[#allocation11 + $0x1c4] ss:$8 sps:$4 sm:$0xff]  }
 0x204   :  { %2460 = vmatprep.subr.bf16.mxu1 %v3287_v2  ;;  %v3233_v2 = vld [vmem:[#allocation9 + $0x1f4] ss:$8 sps:$4 sm:$0xff]  }
 0x207   :  { %2461 = vmatpush1.bf16.msra.mxu1 %v3285_v9  ;;  %v3231_v9 = vld [vmem:[#allocation9 + $0x1f0] ss:$8 sps:$4 sm:$0xff]  }
 0x208   :  { %2462 = vmatprep.subr.bf16.mxu1 %v3290_v13  ;;  %v3234_v13 = vld [vmem:[#allocation9 + $0x200] ss:$8 sps:$4 sm:$0xff]  }
 0x20a   :  { %1289 = vmatmul.mubr.bf16.gmra.mrb[4].mxu1 %v646_v49 }
 0x20b   :  { %2463 = vmatpush1.bf16.msra.mxu1 %v3288_v15  ;;  %v3237_v15 = vld [vmem:[#allocation9 + $0x210] ss:$8 sps:$4 sm:$0xff]  }
 0x20c   :  { %2464 = vmatprep.subr.bf16.mxu1 %v3293_v18  ;;  %v3240_v18 = vld [vmem:[#allocation9 + $0x220] ss:$8 sps:$4 sm:$0xff]  }
 0x20f   :  { %2465 = vmatpush1.bf16.msra.mxu1 %v3291_v21  ;;  %v3243_v21 = vld [vmem:[#allocation9 + $0x230] ss:$8 sps:$4 sm:$0xff]  }
 0x210   :  { %2466 = vmatprep.subr.bf16.mxu1 %v3296_v23  ;;  %v3246_v23 = vld [vmem:[#allocation9 + $0x240] ss:$8 sps:$4 sm:$0xff]  }
 0x213   :  { %2467 = vmatpush1.bf16.msra.mxu1 %v3294_v16  ;;  %v3258_v16 = vld [vmem:[#allocation9 + $0x280] ss:$8 sps:$4 sm:$0xff]  }
 0x2d5   :  { %v1280_v47 = vpop.f32.mrb[0].mxu1 }
 0x2d6   :  { %v2887_v11 = vadd.f32 %v1280_v47, %v653_v43  ;;  %v1282_v42 = vpop.f32.mrb[1].mxu1  ;;  %v3299_v47 = vld [vmem:[#allocation11 + $0x154] ss:$8 sps:$4 sm:$0xff]  }
 0x2d7   :  { %v1284_v44 = vpop.f32.mrb[2].mxu1  ;;  %v2888_v26 = vadd.f32 %v1282_v42, %v657_v6  ;;  %v3204_v42 = vld [vmem:[#allocation9 + $0x160] ss:$8 sps:$4 sm:$0xff]   ;;  %2468 = vmatprep.subr.bf16.mxu1 %v3299_v47  ;;  %v3261_v47 = vld [vmem:[#allocation9 + $0x290] ss:$8 sps:$4 sm:$0xff]  }
 0x2d8   :  { %v2889_v49 = vadd.f32 %v1284_v44, %v653_v43  ;;  %v1286_v52 = vpop.f32.mrb[3].mxu1  ;;  %v1307_v30 = vmul.f32 0.2, %v2887_v11  ;;  %vm1299_vm3 = vcmp.gt.f32.partialorder %v2887_v11, 0.0  ;;  %v3302_v44 = vld [vmem:[#allocation11 + $0x164] ss:$8 sps:$4 sm:$0xff]  }
 0x2d9   :  { %v2890_v25 = vadd.f32 %v1286_v52, %v657_v6  ;;  %v1308_v8 = vmul.f32 0.2, %v2888_v26  ;;  %vm1300_vm4 = vcmp.gt.f32.partialorder %v2888_v26, 0.0  ;;  %v3300_v52 = vld [vmem:[#allocation11 + $0x160] ss:$8 sps:$4 sm:$0xff]  }
 0x2da   :  { %vm1301_vm1 = vcmp.gt.f32.partialorder %v2889_v49, 0.0  ;;  %v1309_v27 = vmul.f32 0.2, %v2889_v49  ;;  %v3862_v35 = vsel %vm1299_vm3, %v2887_v11, %v1307_v30  ;;  %v3206_v11 = vld [vmem:[#allocation9 + $0x164] ss:$8 sps:$4 sm:$0xff]  }
 0x2db   :  { %vm1302_vm2 = vcmp.gt.f32.partialorder %v2890_v25, 0.0  ;;  %v1310_v28 = vmul.f32 0.2, %v2890_v25  ;;  %v1316_v61 = vsel %vm1300_vm4, %v2888_v26, %v1308_v8  ;;  %v3305_v26 = vld [vmem:[#allocation11 + $0x174] ss:$8 sps:$4 sm:$0xff]  }
 0x2dc   :  { %v3853_v29 = vsel %vm1301_vm1, %v2889_v49, %v1309_v27  ;;  %v3209_v49 = vld [vmem:[#allocation9 + $0x174] ss:$8 sps:$4 sm:$0xff]   ;;  %v3212_v27 = vld [vmem:[#allocation9 + $0x184] ss:$8 sps:$4 sm:$0xff]   ;;  %v3210_v30 = vld [vmem:[#allocation9 + $0x180] ss:$8 sps:$4 sm:$0xff]  }
 0x2dd   :  { %v1290_v33 = vpop.f32.mrb[4].mxu1  ;;  %v3855_v34 = vsel %vm1302_vm2, %v2890_v25, %v1310_v28  ;;  %v1419_v53 = vpack.c.bf16 %v3853_v29, %v3528_v55  ;;  %v3207_v25 = vld [vmem:[#allocation9 + $0x170] ss:$8 sps:$4 sm:$0xff]   ;;  %v3215_v8 = vld [vmem:[#allocation9 + $0x194] ss:$8 sps:$4 sm:$0xff]  }
 0x2de   :  { %v2891_v37 = vadd.f32 %v1290_v33, %v653_v43  ;;  %v1292_v40 = vpop.f32.mrb[5].mxu1  ;;  %v1420_v50 = vpack.c.bf16 %v3855_v34, %v3528_v55  ;;  %v3303_v28 = vld [vmem:[#allocation11 + $0x170] ss:$8 sps:$4 sm:$0xff]   ;;  %v3308_v33 = vld [vmem:[#allocation11 + $0x184] ss:$8 sps:$4 sm:$0xff]  }
 0x2df   :  { %v2892_v54 = vadd.f32 %v1292_v40, %v657_v6  ;;  %v1294_v56 = vpop.f32.mrb[6].mxu1  ;;  %v3213_v40 = vld [vmem:[#allocation9 + $0x190] ss:$8 sps:$4 sm:$0xff]  }
 0x2e0   :  { %vm1303_vm5 = vcmp.gt.f32.partialorder %v2891_v37, 0.0  ;;  %v1311_v58 = vmul.f32 0.2, %v2891_v37  ;;  %v2893_v59 = vadd.f32 %v1294_v56, %v653_v43  ;;  %v1296_v60 = vpop.f32.mrb[7].mxu1  ;;  %1949 = vmatprep.mubr.bf16.mxu0 %v1420_v50  ;;  %v3201_v43 = vld [vmem:[#allocation9 + $0x150] ss:$8 sps:$4 sm:$0xff]  }
 0x2e1   :  { %vm1304_vm6 = vcmp.gt.f32.partialorder %v2892_v54, 0.0  ;;  %v1312_v39 = vmul.f32 0.2, %v2892_v54  ;;  %v2894_v3 = vadd.f32 %v1296_v60, %v657_v6  ;;  %1950 = vmatmul.mubr.bf16.vlgmr.msra.gmra.mrb[16].mxu0 %v1419_v53  ;;  %v3297_v6 = vld [vmem:[#allocation11 + $0x150] ss:$8 sps:$4 sm:$0xff]  }
 0x2e2   :  { %v3864_v38 = vsel %vm1303_vm5, %v2891_v37, %v1311_v58  ;;  %vm1305_vm7 = vcmp.gt.f32.partialorder %v2893_v59, 0.0  ;;  %v1313_v55 = vmul.f32 0.2, %v2893_v59  ;;  %1961 = vmatpush1.bf16.msra.mxu0 %v3186_v51  ;;  %2469 = vmatpush1.bf16.msra.mxu1 %v3297_v6  ;;  %v3306_v37 = vld [vmem:[#allocation11 + $0x180] ss:$8 sps:$4 sm:$0xff]  }
 0x2e3   :  { %v1421_v36 = vpack.c.bf16 %v3864_v38, %v3862_v35  ;;  %vm1306_vm8 = vcmp.gt.f32.partialorder %v2894_v3, 0.0  ;;  %v1314_v19 = vmul.f32 0.2, %v2894_v3  ;;  %1962 = vmatprep.subr.bf16.mxu0 %v3191_v57  ;;  %v1320_v45 = vsel %vm1304_vm6, %v2892_v54, %v1312_v39  ;;  %2470 = vmatprep.subr.bf16.mxu1 %v3302_v44  ;;  %v3311_v50 = vld [vmem:[#allocation11 + $0x194] ss:$8 sps:$4 sm:$0xff]  }
 0x2e4   :  { %v3869_v46 = vsel %vm1305_vm7, %v2893_v59, %v1313_v55  ;;  %v1422_v62 = vpack.c.bf16 %v1320_v45, %v1316_v61  ;;  %v3218_v51 = vld [vmem:[#allocation9 + $0x1a4] ss:$8 sps:$4 sm:$0xff]   ;;  %v3309_v53 = vld [vmem:[#allocation11 + $0x190] ss:$8 sps:$4 sm:$0xff]   ;;  %v3216_v54 = vld [vmem:[#allocation9 + $0x1a0] ss:$8 sps:$4 sm:$0xff]  }
 0x2e5   :  { %v1423_v5 = vpack.c.bf16 %v3869_v46, %v3853_v29  ;;  %v3873_v7 = vsel %vm1306_vm8, %v2894_v3, %v1314_v19  ;;  %v3314_v56 = vld [vmem:[#allocation11 + $0x1a4] ss:$8 sps:$4 sm:$0xff]   ;;  %v3221_v57 = vld [vmem:[#allocation9 + $0x1b4] ss:$8 sps:$4 sm:$0xff]   ;;  %v3312_v58 = vld [vmem:[#allocation11 + $0x1a0] ss:$8 sps:$4 sm:$0xff]  }
 0x2e6   :  { %1963 = vmatpush1.bf16.msra.mxu0 %v3189_v32  ;;  %1992 = vmatprep.mubr.bf16.mxu0 %v1422_v62  ;;  %v1424_v12 = vpack.c.bf16 %v3873_v7, %v3855_v34  ;;  %v3219_v59 = vld [vmem:[#allocation9 + $0x1b0] ss:$8 sps:$4 sm:$0xff]   ;;  %v3317_v60 = vld [vmem:[#allocation11 + $0x1b4] ss:$8 sps:$4 sm:$0xff]   ;;  %v3224_v32 = vld [vmem:[#allocation9 + $0x1c4] ss:$8 sps:$4 sm:$0xff]  }
 0x2e7   :  { %1964 = vmatprep.subr.bf16.mxu0 %v3194_v48  ;;  %2471 = vmatpush1.bf16.msra.mxu1 %v3300_v52  ;;  %v3315_v39 = vld [vmem:[#allocation11 + $0x1b0] ss:$8 sps:$4 sm:$0xff]   ;;  %v3222_v3 = vld [vmem:[#allocation9 + $0x1c0] ss:$8 sps:$4 sm:$0xff]   ;;  %v3227_v55 = vld [vmem:[#allocation9 + $0x1d4] ss:$8 sps:$4 sm:$0xff]  }
 0x2e8   :  { %2472 = vmatprep.subr.bf16.mxu1 %v3305_v26  ;;  %v3318_v61 = vld [vmem:[#allocation11 + $0x1c0] ss:$8 sps:$4 sm:$0xff]   ;;  %v3323_v19 = vld [vmem:[#allocation11 + $0x1d4] ss:$8 sps:$4 sm:$0xff]   ;;  %v3230_v45 = vld [vmem:[#allocation9 + $0x1e4] ss:$8 sps:$4 sm:$0xff]  }
 0x2e9   :  { %v3321_v48 = vld [vmem:[#allocation11 + $0x1d0] ss:$8 sps:$4 sm:$0xff]   ;;  %v3228_v62 = vld [vmem:[#allocation9 + $0x1e0] ss:$8 sps:$4 sm:$0xff]   ;;  %v3251_v35 = vld [vmem:[#allocation9 + $0x254] ss:$8 sps:$4 sm:$0xff]  }
 0x2ea   :  { %1965 = vmatpush1.bf16.msra.mxu0 %v3192_v10  ;;  %v3236_v10 = vld [vmem:[#allocation9 + $0x204] ss:$8 sps:$4 sm:$0xff]   ;;  %v3249_v38 = vld [vmem:[#allocation9 + $0x250] ss:$8 sps:$4 sm:$0xff]   ;;  %v3257_v7 = vld [vmem:[#allocation9 + $0x274] ss:$8 sps:$4 sm:$0xff]  }
 0x2eb   :  { %1966 = vmatprep.subr.bf16.mxu0 %v3197_v14  ;;  %2473 = vmatpush1.bf16.msra.mxu1 %v3303_v28  ;;  %v3239_v14 = vld [vmem:[#allocation9 + $0x214] ss:$8 sps:$4 sm:$0xff]   ;;  %v3254_v34 = vld [vmem:[#allocation9 + $0x264] ss:$8 sps:$4 sm:$0xff]   ;;  %v3264_v6 = vld [vmem:[#allocation9 + $0x2a0] ss:$8 sps:$4 sm:$0xff]  }
 0x2ec   :  { %2474 = vmatprep.subr.bf16.mxu1 %v3308_v33  ;;  %v3267_v44 = vld [vmem:[#allocation9 + $0x2b0] ss:$8 sps:$4 sm:$0xff]   ;;  %v3270_v52 = vld [vmem:[#allocation9 + $0x2c0] ss:$8 sps:$4 sm:$0xff]  }
 0x2ed   :  { %v3273_v26 = vld [vmem:[#allocation9 + $0x2d0] ss:$8 sps:$4 sm:$0xff]   ;;  %v3276_v28 = vld [vmem:[#allocation9 + $0x2e0] ss:$8 sps:$4 sm:$0xff]  }
 0x2ee   :  { %1967 = vmatpush1.bf16.msra.mxu0 %v3195_v17  ;;  %v3242_v17 = vld [vmem:[#allocation9 + $0x224] ss:$8 sps:$4 sm:$0xff]   ;;  %v3279_v33 = vld [vmem:[#allocation9 + $0x2f0] ss:$8 sps:$4 sm:$0xff]  }
 0x2ef   :  { %1968 = vmatprep.subr.bf16.mxu0 %v3200_v20  ;;  %2475 = vmatpush1.bf16.msra.mxu1 %v3306_v37  ;;  %v3245_v20 = vld [vmem:[#allocation9 + $0x234] ss:$8 sps:$4 sm:$0xff]   ;;  %v3324_v37 = vld [vmem:[#allocation11 + $0x1e0] ss:$8 sps:$4 sm:$0xff]  }
 0x2f0   :  { %2476 = vmatprep.subr.bf16.mxu1 %v3311_v50  ;;  %v3327_v50 = vld [vmem:[#allocation11 + $0x1f0] ss:$8 sps:$4 sm:$0xff]  }
 0x2f2   :  { %1969 = vmatpush1.bf16.msra.mxu0 %v3198_v22  ;;  %v3248_v22 = vld [vmem:[#allocation9 + $0x244] ss:$8 sps:$4 sm:$0xff]  }
 0x2f3   :  { %1970 = vmatprep.subr.bf16.mxu0 %v3203_v24  ;;  %2477 = vmatpush1.bf16.msra.mxu1 %v3309_v53  ;;  %v3260_v24 = vld [vmem:[#allocation9 + $0x284] ss:$8 sps:$4 sm:$0xff]  }
 0x2f4   :  { %2478 = vmatprep.subr.bf16.mxu1 %v3314_v56  ;;  %v1425_v53 = vld [vmem:[%s3928_s7] sm:$0x3] }
 0x2f5   :  { %v1434_v56 = vrot.slane %v1425_v53, %v3741_v4 }
 0x2f6   :  { %1971 = vmatpush1.bf16.msra.mxu0 %v3201_v43  ;;  %v3263_v43 = vld [vmem:[#allocation9 + $0x294] ss:$8 sps:$4 sm:$0xff]  }
 0x2f7   :  { %1972 = vmatprep.subr.bf16.mxu0 %v3206_v11  ;;  %2479 = vmatpush1.bf16.msra.mxu1 %v3312_v58  ;;  %v3266_v11 = vld [vmem:[#allocation9 + $0x2a4] ss:$8 sps:$4 sm:$0xff]  }
 0x2f8   :  { %2480 = vmatprep.subr.bf16.mxu1 %v3317_v60 }
 0x2fa   :  { %1973 = vmatpush1.bf16.msra.mxu0 %v3204_v42  ;;  %v3269_v42 = vld [vmem:[#allocation9 + $0x2b4] ss:$8 sps:$4 sm:$0xff]  }
 0x2fb   :  { %1974 = vmatprep.subr.bf16.mxu0 %v3209_v49  ;;  %2481 = vmatpush1.bf16.msra.mxu1 %v3315_v39  ;;  %v3272_v49 = vld [vmem:[#allocation9 + $0x2c4] ss:$8 sps:$4 sm:$0xff]  }
 0x2fc   :  { %2482 = vmatprep.subr.bf16.mxu1 %v3320_v41 }
 0x2fe   :  { %1975 = vmatpush1.bf16.msra.mxu0 %v3207_v25  ;;  %v3275_v25 = vld [vmem:[#allocation9 + $0x2d4] ss:$8 sps:$4 sm:$0xff]  }
 0x2ff   :  { %1976 = vmatprep.subr.bf16.mxu0 %v3212_v27  ;;  %2483 = vmatpush1.bf16.msra.mxu1 %v3318_v61  ;;  %v3278_v27 = vld [vmem:[#allocation9 + $0x2e4] ss:$8 sps:$4 sm:$0xff]  }
 0x300   :  { %2484 = vmatprep.subr.bf16.mxu1 %v3323_v19  ;;  %v3330_v19 = vld [vmem:[#allocation11 + $0x200] ss:$8 sps:$4 sm:$0xff]  }
 0x302   :  { %1977 = vmatpush1.bf16.msra.mxu0 %v3210_v30  ;;  %v3281_v30 = vld [vmem:[#allocation9 + $0x2f4] ss:$8 sps:$4 sm:$0xff]  }
 0x303   :  { %1978 = vmatprep.subr.bf16.mxu0 %v3215_v8  ;;  %2485 = vmatpush1.bf16.msra.mxu1 %v3321_v48  ;;  %v3326_v8 = vld [vmem:[#allocation11 + $0x1e4] ss:$8 sps:$4 sm:$0xff]  }
 0x304   :  { %2486 = vmatprep.subr.bf16.mxu1 %v3326_v8 }
 0x306   :  { %1979 = vmatpush1.bf16.msra.mxu0 %v3213_v40  ;;  %v3329_v40 = vld [vmem:[#allocation11 + $0x1f4] ss:$8 sps:$4 sm:$0xff]  }
 0x307   :  { %1980 = vmatprep.subr.bf16.mxu0 %v3218_v51  ;;  %2487 = vmatpush1.bf16.msra.mxu1 %v3324_v37  ;;  %v3332_v51 = vld [vmem:[#allocation11 + $0x204] ss:$8 sps:$4 sm:$0xff]  }
 0x308   :  { %2488 = vmatprep.subr.bf16.mxu1 %v3329_v40  ;;  %v2546_v40 = vld [vmem:[%s3930_s9] sm:$0x3] }
 0x30a   :  { %1981 = vmatpush1.bf16.msra.mxu0 %v3216_v54  ;;  %v1430_v54 = vrot.slane %v1425_v53, %v3732_v1 }
 0x30b   :  { %1982 = vmatprep.subr.bf16.mxu0 %v3221_v57  ;;  %2489 = vmatpush1.bf16.msra.mxu1 %v3327_v50 }
 0x30c   :  { %2499 = vmatprep.subr.bf16.mxu1 %v3332_v51 }
 0x30e   :  { %1983 = vmatpush1.bf16.msra.mxu0 %v3219_v59 }
 0x30f   :  { %1984 = vmatprep.subr.bf16.mxu0 %v3224_v32 }
 0x312   :  { %1985 = vmatpush1.bf16.msra.mxu0 %v3222_v3 }
 0x313   :  { %1986 = vmatprep.subr.bf16.mxu0 %v3227_v55 }
 0x316   :  { %1987 = vmatpush1.bf16.msra.mxu0 %v3225_v31 }
 0x317   :  { %1988 = vmatprep.subr.bf16.mxu0 %v3230_v45 }
 0x31a   :  { %1989 = vmatpush1.bf16.msra.mxu0 %v3228_v62  ;;  %v3335_v62 = vld [vmem:[#allocation11 + $0x214] ss:$8 sps:$4 sm:$0xff]  }
 0x31b   :  { %1990 = vmatprep.subr.bf16.mxu0 %v3233_v2 }
 0x31e   :  { %1991 = vmatpush1.bf16.msra.mxu0 %v3231_v9  ;;  %v3333_v9 = vld [vmem:[#allocation11 + $0x210] ss:$8 sps:$4 sm:$0xff]  }
 0x31f   :  { %2003 = vmatprep.subr.bf16.mxu0 %v3236_v10  ;;  %v3338_v10 = vld [vmem:[#allocation11 + $0x224] ss:$8 sps:$4 sm:$0xff]  }
 0x321   :  { %1993 = vmatmul.mubr.bf16.vlgmr.msra.gmra.mrb[16].mxu0 %v1421_v36  ;;  %v3252_v36 = vld [vmem:[#allocation9 + $0x260] ss:$8 sps:$4 sm:$0xff]  }
 0x322   :  { %2004 = vmatpush1.bf16.msra.mxu0 %v3234_v13  ;;  %2035 = vmatprep.mubr.bf16.mxu0 %v1424_v12  ;;  %v3255_v12 = vld [vmem:[#allocation9 + $0x270] ss:$8 sps:$4 sm:$0xff]   ;;  %v3336_v13 = vld [vmem:[#allocation11 + $0x220] ss:$8 sps:$4 sm:$0xff]  }
 0x323   :  { %2005 = vmatprep.subr.bf16.mxu0 %v3239_v14  ;;  %v3341_v14 = vld [vmem:[#allocation11 + $0x234] ss:$8 sps:$4 sm:$0xff]  }
 0x326   :  { %2006 = vmatpush1.bf16.msra.mxu0 %v3237_v15  ;;  %v3339_v15 = vld [vmem:[#allocation11 + $0x230] ss:$8 sps:$4 sm:$0xff]  }
 0x327   :  { %2007 = vmatprep.subr.bf16.mxu0 %v3242_v17  ;;  %v3344_v17 = vld [vmem:[#allocation11 + $0x244] ss:$8 sps:$4 sm:$0xff]  }
 0x32a   :  { %2008 = vmatpush1.bf16.msra.mxu0 %v3240_v18  ;;  %v3342_v18 = vld [vmem:[#allocation11 + $0x240] ss:$8 sps:$4 sm:$0xff]  }
 0x32b   :  { %2009 = vmatprep.subr.bf16.mxu0 %v3245_v20  ;;  %v3347_v20 = vld [vmem:[#allocation11 + $0x254] ss:$8 sps:$4 sm:$0xff]  }
 0x32e   :  { %2010 = vmatpush1.bf16.msra.mxu0 %v3243_v21  ;;  %v3345_v21 = vld [vmem:[#allocation11 + $0x250] ss:$8 sps:$4 sm:$0xff]  }
 0x32f   :  { %2011 = vmatprep.subr.bf16.mxu0 %v3248_v22  ;;  %v3350_v22 = vld [vmem:[#allocation11 + $0x264] ss:$8 sps:$4 sm:$0xff]  }
 0x332   :  { %2012 = vmatpush1.bf16.msra.mxu0 %v3246_v23  ;;  %v3348_v23 = vld [vmem:[#allocation11 + $0x260] ss:$8 sps:$4 sm:$0xff]  }
 0x333   :  { %2013 = vmatprep.subr.bf16.mxu0 %v3251_v35  ;;  %v3353_v35 = vld [vmem:[#allocation11 + $0x274] ss:$8 sps:$4 sm:$0xff]  }
 0x336   :  { %2014 = vmatpush1.bf16.msra.mxu0 %v3249_v38  ;;  %v3351_v38 = vld [vmem:[#allocation11 + $0x270] ss:$8 sps:$4 sm:$0xff]  }
 0x337   :  { %2015 = vmatprep.subr.bf16.mxu0 %v3254_v34  ;;  %v3356_v34 = vld [vmem:[#allocation11 + $0x284] ss:$8 sps:$4 sm:$0xff]  }
 0x33a   :  { %2016 = vmatpush1.bf16.msra.mxu0 %v3252_v36  ;;  %v3354_v36 = vld [vmem:[#allocation11 + $0x280] ss:$8 sps:$4 sm:$0xff]  }
 0x33b   :  { %2017 = vmatprep.subr.bf16.mxu0 %v3257_v7  ;;  %v3359_v7 = vld [vmem:[#allocation11 + $0x294] ss:$8 sps:$4 sm:$0xff]  }
 0x33e   :  { %2018 = vmatpush1.bf16.msra.mxu0 %v3255_v12  ;;  %v3357_v12 = vld [vmem:[#allocation11 + $0x290] ss:$8 sps:$4 sm:$0xff]  }
 0x33f   :  { %2019 = vmatprep.subr.bf16.mxu0 %v3260_v24  ;;  %v3362_v24 = vld [vmem:[#allocation11 + $0x2a4] ss:$8 sps:$4 sm:$0xff]  }
 0x342   :  { %2020 = vmatpush1.bf16.msra.mxu0 %v3258_v16  ;;  %v3360_v16 = vld [vmem:[#allocation11 + $0x2a0] ss:$8 sps:$4 sm:$0xff]  }
 0x343   :  { %2021 = vmatprep.subr.bf16.mxu0 %v3263_v43  ;;  %v3365_v43 = vld [vmem:[#allocation11 + $0x2b4] ss:$8 sps:$4 sm:$0xff]  }
 0x346   :  { %2022 = vmatpush1.bf16.msra.mxu0 %v3261_v47  ;;  %v3363_v47 = vld [vmem:[#allocation11 + $0x2b0] ss:$8 sps:$4 sm:$0xff]  }
 0x347   :  { %2023 = vmatprep.subr.bf16.mxu0 %v3266_v11  ;;  %v3368_v11 = vld [vmem:[#allocation11 + $0x2c4] ss:$8 sps:$4 sm:$0xff]  }
 0x34a   :  { %2024 = vmatpush1.bf16.msra.mxu0 %v3264_v6  ;;  %v3366_v6 = vld [vmem:[#allocation11 + $0x2c0] ss:$8 sps:$4 sm:$0xff]  }
 0x34b   :  { %2025 = vmatprep.subr.bf16.mxu0 %v3269_v42  ;;  %v3371_v42 = vld [vmem:[#allocation11 + $0x2d4] ss:$8 sps:$4 sm:$0xff]  }
 0x34e   :  { %2026 = vmatpush1.bf16.msra.mxu0 %v3267_v44  ;;  %v3369_v44 = vld [vmem:[#allocation11 + $0x2d0] ss:$8 sps:$4 sm:$0xff]  }
 0x34f   :  { %2027 = vmatprep.subr.bf16.mxu0 %v3272_v49  ;;  %v3374_v49 = vld [vmem:[#allocation11 + $0x2e4] ss:$8 sps:$4 sm:$0xff]  }
 0x352   :  { %2028 = vmatpush1.bf16.msra.mxu0 %v3270_v52  ;;  %v3372_v52 = vld [vmem:[#allocation11 + $0x2e0] ss:$8 sps:$4 sm:$0xff]  }
 0x353   :  { %2029 = vmatprep.subr.bf16.mxu0 %v3275_v25  ;;  %v3377_v25 = vld [vmem:[#allocation11 + $0x2f4] ss:$8 sps:$4 sm:$0xff]  }
 0x356   :  { %2030 = vmatpush1.bf16.msra.mxu0 %v3273_v26 }
 0x357   :  { %2031 = vmatprep.subr.bf16.mxu0 %v3278_v27  ;;  %v3375_v27 = vld [vmem:[#allocation11 + $0x2f0] ss:$8 sps:$4 sm:$0xff]  }
 0x35a   :  { %2032 = vmatpush1.bf16.msra.mxu0 %v3276_v28 }
 0x35b   :  { %2033 = vmatprep.subr.bf16.mxu0 %v3281_v30 }
 0x35e   :  { %2034 = vmatpush1.bf16.msra.mxu0 %v3279_v33  ;;  %v2126_v33 = vld [vmem:[%s3929_s8] sm:$0x3]  ;;  %s3529_s8 = smov [#allocation12]  }
 0x35f   :  { %v2131_v8 = vrot.slane %v2126_v33, %v3732_v1  ;;  %v2135_v37 = vrot.slane %v2126_v33, %v3741_v4  ;;  %s2591_s9 = sshll.u32 %s3529_s8, 4  ;;  %s2592_s9 = int_to_ptr.vmem [resolvable:$true] %s2591_s9 }
 0x360   :  { %s3488_s25 = scalar_lea.vmem %s2592_s9, 16  ;;  %s3492_s26 = scalar_lea.vmem %s2592_s9, 32 }
 0x361   :  { %2036 = vmatmul.mubr.bf16.vlgmr.msra.gmra.mrb[16].mxu0 %v1423_v5  ;;  %p3489_p12 = scmp.ne.s32.totalorder %s2592_s9, %s3488_s25  ;;  %p3493_p13 = scmp.lt.s32.totalorder %s2592_s9, %s2592_s9 }
 0x362   :  { %p3494_p0 = scmp.lt.s32.totalorder %s3492_s26, %s3488_s25 }
 0x364   :  { %p3495_p1 = por %p3494_p0, %p3493_p13 }
 0x366   :  { %p3496_p2 = pnand %p3495_p1, %p3489_p12 }
 0x434   :  { %v2037_v29 = vpop.f32.mrb[16].mxu0 }
 0x435   :  { %v2895_v46 = vadd.f32 %v2037_v29, %v1430_v54  ;;  %v2039_v5 = vpop.f32.mrb[17].mxu0  ;;  %v2551_v29 = vrot.slane %v2546_v40, %v3732_v1 }
 0x436   :  { %v2896_v57 = vadd.f32 %v2039_v5, %v1434_v56  ;;  %v2041_v58 = vpop.f32.mrb[18].mxu0 }
 0x437   :  { %vm2046_vm9 = vcmp.gt.f32.partialorder %v2895_v46, 0.0  ;;  %v2050_v59 = vmul.f32 0.2, %v2895_v46  ;;  %v3891_v60 = vadd.f32 %v2041_v58, %v1430_v54  ;;  %v2043_v32 = vpop.f32.mrb[19].mxu0 }
 0x438   :  { %vm2047_vm10 = vcmp.gt.f32.partialorder %v2896_v57, 0.0  ;;  %v2051_v39 = vmul.f32 0.2, %v2896_v57  ;;  %v2898_v3 = vadd.f32 %v2043_v32, %v1434_v56 }
 0x439   :  { %v2054_v41 = vsel %vm2046_vm9, %v2895_v46, %v2050_v59  ;;  %v2052_v26 = vmul.f32 0.2, %v3891_v60  ;;  %vm2048_vm12 = vcmp.gt.f32.partialorder %v3891_v60, 0.0 }
 0x43a   :  { %vm2049_vm11 = vcmp.gt.f32.partialorder %v2898_v3, 0.0  ;;  %v2053_v55 = vmul.f32 0.2, %v2898_v3  ;;  %v2055_v61 = vsel %vm2047_vm10, %v2896_v57, %v2051_v39  ;;  %v2122_v45 = vpack.c.bf16 %v2054_v41, %v2054_v41  ;;  %v2564_v41 = vld [vmem:[#allocation2] sm:$0x1] }
 0x43b   :  { %v2123_v31 = vpack.c.bf16 %v2055_v61, %v2055_v61  ;;  %v2056_v28 = vsel %vm2048_vm12, %v3891_v60, %v2052_v26  ;;  %v2555_v57 = vrot.slane %v2546_v40, %v3741_v4  ;;  %v2577_v61 = vand.u32 127, %v466_v63 }
 0x43c   :  { %v2057_v48 = vsel %vm2049_vm11, %v2898_v3, %v2053_v55  ;;  %v2124_v30 = vpack.c.bf16 %v2056_v28, %v2056_v28 }
 0x43d   :  { %2490 = vmatprep.mubr.bf16.mxu1 %v2123_v31  ;;  %v2125_v2 = vpack.c.bf16 %v2057_v48, %v2057_v48 }
 0x43e   :  { %2491 = vmatmul.mubr.bf16.vlgmr.msra.gmra.mrb[8].mxu1 %v2122_v45 }
 0x43f   :  { %2500 = vmatpush1.bf16.msra.mxu1 %v3330_v19  ;;  %2531 = vmatprep.mubr.bf16.mxu1 %v2125_v2  ;;  %v2580_v19 = vsub.s32 %v2577_v61, %v3729_v0 }
 0x440   :  { %2501 = vmatprep.subr.bf16.mxu1 %v3335_v62 }
 0x443   :  { %2502 = vmatpush1.bf16.msra.mxu1 %v3333_v9 }
 0x444   :  { %2503 = vmatprep.subr.bf16.mxu1 %v3338_v10 }
 0x447   :  { %2504 = vmatpush1.bf16.msra.mxu1 %v3336_v13 }
 0x448   :  { %2505 = vmatprep.subr.bf16.mxu1 %v3341_v14 }
 0x44b   :  { %2506 = vmatpush1.bf16.msra.mxu1 %v3339_v15 }
 0x44c   :  { %2507 = vmatprep.subr.bf16.mxu1 %v3344_v17 }
 0x44f   :  { %2508 = vmatpush1.bf16.msra.mxu1 %v3342_v18 }
 0x450   :  { %2509 = vmatprep.subr.bf16.mxu1 %v3347_v20 }
 0x453   :  { %2510 = vmatpush1.bf16.msra.mxu1 %v3345_v21 }
 0x454   :  { %2511 = vmatprep.subr.bf16.mxu1 %v3350_v22 }
 0x457   :  { %2512 = vmatpush1.bf16.msra.mxu1 %v3348_v23 }
 0x458   :  { %2513 = vmatprep.subr.bf16.mxu1 %v3353_v35 }
 0x45b   :  { %2514 = vmatpush1.bf16.msra.mxu1 %v3351_v38 }
 0x45c   :  { %2515 = vmatprep.subr.bf16.mxu1 %v3356_v34 }
 0x45f   :  { %2516 = vmatpush1.bf16.msra.mxu1 %v3354_v36 }
 0x460   :  { %2517 = vmatprep.subr.bf16.mxu1 %v3359_v7 }
 0x463   :  { %2518 = vmatpush1.bf16.msra.mxu1 %v3357_v12 }
 0x464   :  { %2519 = vmatprep.subr.bf16.mxu1 %v3362_v24 }
 0x467   :  { %2520 = vmatpush1.bf16.msra.mxu1 %v3360_v16 }
 0x468   :  { %2521 = vmatprep.subr.bf16.mxu1 %v3365_v43 }
 0x46b   :  { %2522 = vmatpush1.bf16.msra.mxu1 %v3363_v47 }
 0x46c   :  { %2523 = vmatprep.subr.bf16.mxu1 %v3368_v11 }
 0x46f   :  { %2524 = vmatpush1.bf16.msra.mxu1 %v3366_v6 }
 0x470   :  { %2525 = vmatprep.subr.bf16.mxu1 %v3371_v42 }
 0x473   :  { %2526 = vmatpush1.bf16.msra.mxu1 %v3369_v44 }
 0x474   :  { %2527 = vmatprep.subr.bf16.mxu1 %v3374_v49 }
 0x477   :  { %2528 = vmatpush1.bf16.msra.mxu1 %v3372_v52 }
 0x478   :  { %2529 = vmatprep.subr.bf16.mxu1 %v3377_v25 }
 0x47b   :  { %2530 = vmatpush1.bf16.msra.mxu1 %v3375_v27 }
 0x47e   :  { %2532 = vmatmul.mubr.bf16.vlgmr.msra.gmra.mrb[8].mxu1 %v2124_v30 }
 0x551   :  { %v2533_v50 = vpop.f32.mrb[8].mxu1 }
 0x552   :  { %v2899_v51 = vadd.f32 %v2533_v50, %v2131_v8  ;;  %v2535_v53 = vpop.f32.mrb[9].mxu1 }
 0x553   :  { %v2900_v54 = vadd.f32 %v2535_v53, %v2135_v37  ;;  %v2537_v56 = vpop.f32.mrb[10].mxu1 }
 0x554   :  { %vm2540_vm13 = vcmp.gt.f32.partialorder %v2899_v51, 0.0  ;;  %v2542_v46 = vmul.f32 0.2, %v2899_v51  ;;  %v2538_v5 = vpop.f32.mrb[11].mxu1 }
 0x555   :  { %vm2541_vm14 = vcmp.gt.f32.partialorder %v2900_v54, 0.0  ;;  %v2543_v58 = vmul.f32 0.2, %v2900_v54 }
 0x556   :  { %v2544_v59 = vsel %vm2540_vm13, %v2899_v51, %v2542_v46 }
 0x557   :  { %v2545_v60 = vsel %vm2541_vm14, %v2900_v54, %v2543_v58  ;;  %v2558_v32 = vmul.f32 %v2551_v29, %v2544_v59 }
 0x558   :  { %v2559_v39 = vmul.f32 %v2555_v57, %v2545_v60 }
 0x55a   :  { %v2560_v3 = vadd.f32 %v2559_v39, %v2558_v32 }
 0x55c   :  { %2561 = vadd.xlane.f32.xlu0 %v2560_v3 }
 0x572   :  { %2567 = vperm.xlu0 %2973, %v2564_v41  }
 0x5e9   :  { %v2562_v55 = vpop.xlane.xlu0 %2561 }
 0x5f1   :  { %v2568_v31 = vpop.permute.xlu0 %2567 }
 0x5f2   :  { %v2573_v45 = vrot.slane %v2568_v31, %v3732_v1 }
 0x5f4   :  { %v2574_v4 = vadd.f32 %v2573_v45, %v2562_v55 }
 0x5f6   :  { %v2581_v48 = vrot.slane %v2574_v4, %v2580_v19 }
 0x5f8   :  { %2584 = vst.msk [vmem:[#allocation12] sm:$0x1] %vm2583_vm15, %v2581_v48 }
 0x5f9   :  { %3499 = shalt.err (!%p3496_p2)
}
 0x5fa   :  { %s3500_s30 = scalar_lea.hbm %s3932_s11, 16 }
 0x5fb   :  { %p3501_p3 = scmp.ne.s32.totalorder %s3932_s11, %s3500_s30  ;;  %p3504_p4 = scmp.lt.u32.totalorder %s3500_s30, %s3932_s11 }
 0x5fd   :  { %p3506_p5 = pnand %p3504_p4, %p3501_p3 }
 0x5ff   :  { %3509 = shalt.err (!%p3506_p5)
}
 0x600   :  { %2594 = dma.vmem_to_hbm [thread:$0]  %s2592_s9, 16, %s3932_s11, [#allocation5]  }
 0x601   :  { %3516 = dma.done.wait [#allocation5], 16  }
 0x602   :  { %3517 = vsyncadd [#allocation5], 4294967280 }
 0x603   :  { %2598 = vsyncpa [#allocation4], 1 }
 0x604   :  { %2599 = vsyncpa [#allocation7], 1 }
 0x605   :  { %2600 = vsyncpa [#allocation10], 1 }
 0x606   :  { %2601 = vsyncpa [#allocation5], 1 }

</bundles_post_ra>
